<compile_context>
chip_gen: v7x
topology: tpu7x:2x2x1
jax: 0.10.0
libtpu: 0.0.40
codegen_flags: <defaults>
</compile_context>

<pallas_src>
import jax
import jax.numpy as jnp
from jax.experimental import pallas as pl
from jax.experimental.pallas import tpu as pltpu

d_model = 192
d_hidden = 4 * d_model      # 768
seq_len = 128
# dropout = 0.2 in the PyTorch module; forward is reproduced in eval mode
# (dropout == identity).


def ffn_kernel(x_ref, w1_ref, b1_ref, w2_ref, b2_ref, o_ref):
    """Fused MLP for one row tile: y = ReLU(x @ W1^T + b1) @ W2^T + b2."""
    x = x_ref[...]                                               # (tm, C)

    # First Linear (C -> 4C) on the MXU, f32 accumulation; bias + ReLU on the VPU.
    h = jnp.dot(x, w1_ref[...], preferred_element_type=jnp.float32)
    h = jnp.maximum(h + b1_ref[...], 0.0)                        # (tm, H)

    # Second Linear (4C -> C) on the MXU.
    y = jnp.dot(h, w2_ref[...], preferred_element_type=jnp.float32)
    o_ref[...] = y + b2_ref[...]                                 # (tm, C) dense store

    # TODO(synk): nn.Dropout(0.2) omitted — forward reproduced in eval/inference mode.


def feed_forward(x, w1_t, b1, w2_t, b2, *, tm=128):
    """x: (B, T, C); w1_t: (C, H); b1: (1, H); w2_t: (H, C); b2: (1, C)."""
    B, T, C = x.shape
    H = w1_t.shape[1]

    # Flatten batch x seq into one row axis; pad rows to a multiple of the tile.
    M = B * T
    x2 = x.reshape(M, C)
    n_tiles = pl.cdiv(M, tm)
    Mp = n_tiles * tm
    if Mp != M:
        x2 = jnp.pad(x2, ((0, Mp - M), (0, 0)))

    out = pl.pallas_call(
        ffn_kernel,
        out_shape=jax.ShapeDtypeStruct((Mp, C), jnp.float32),
        grid=(n_tiles,),
        in_specs=[
            pl.BlockSpec((tm, C), lambda i: (i, 0)),   # row tile of activations
            pl.BlockSpec((C, H), lambda i: (0, 0)),    # W1^T, VMEM-resident
            pl.BlockSpec((1, H), lambda i: (0, 0)),    # b1
            pl.BlockSpec((H, C), lambda i: (0, 0)),    # W2^T, VMEM-resident
            pl.BlockSpec((1, C), lambda i: (0, 0)),    # b2
        ],
        out_specs=pl.BlockSpec((tm, C), lambda i: (i, 0)),
        compiler_params=pltpu.CompilerParams(
            dimension_semantics=("parallel",)),
    )(x2, w1_t, b1, w2_t, b2)

    return out[:M].reshape(B, T, C)


def reference(x, w1_t, b1, w2_t, b2):
    """Pure-JAX reference of the PyTorch forward (eval mode)."""
    h = jnp.maximum(x @ w1_t + b1[0], 0.0)
    return h @ w2_t + b2[0]


if __name__ == "__main__":
    B, T = 2, seq_len
    key = jax.random.PRNGKey(0)
    kx, k1, kb1, k2, kb2 = jax.random.split(key, 5)

    x = jax.random.normal(kx, (B, T, d_model), dtype=jnp.float32)
    # nn.Linear weights stored pre-transposed as (in_features, out_features),
    # so y = x @ W^T becomes x @ w_t.  Biases kept 2D (1, out) for tiling.
    w1_t = 0.02 * jax.random.normal(k1, (d_model, d_hidden), jnp.float32)
    b1 = 0.02 * jax.random.normal(kb1, (1, d_hidden), jnp.float32)
    w2_t = 0.02 * jax.random.normal(k2, (d_hidden, d_model), jnp.float32)
    b2 = 0.02 * jax.random.normal(kb2, (1, d_model), jnp.float32)

    out = feed_forward(x, w1_t, b1, w2_t, b2)
    out = jax.block_until_ready(out)

    ref = reference(x, w1_t, b1, w2_t, b2)
    assert out.shape == (B, T, d_model)
    assert jnp.allclose(out, ref, atol=1e-4, rtol=1e-4)

    print("KERNEL_OK")
</pallas_src>

<mosaic_0001>
module attributes {stable_mosaic.version = 11 : i64} {
  func.func @ffn_kernel(%arg0: i32, %arg1: memref<128x192xf32, #tpu.memory_space<vmem>>, %arg2: memref<192x768xf32, #tpu.memory_space<vmem>>, %arg3: memref<1x768xf32, #tpu.memory_space<vmem>>, %arg4: memref<768x192xf32, #tpu.memory_space<vmem>>, %arg5: memref<1x192xf32, #tpu.memory_space<vmem>>, %arg6: memref<128x192xf32, #tpu.memory_space<vmem>>) attributes {dimension_semantics = [#tpu.dimension_semantics<parallel>], iteration_bounds = array<i64: 2>, scalar_prefetch = 0 : i64, scratch_operands = 0 : i64, tpu.core_type = #tpu.core_type<tc>, window_params = [{transform_indices = @transform_0, window_bounds = array<i64: 128, 192>}, {pipeline_mode = #tpu.pipeline_mode<synchronous>, transform_indices = @transform_1, window_bounds = array<i64: 192, 768>}, {pipeline_mode = #tpu.pipeline_mode<synchronous>, transform_indices = @transform_2, window_bounds = array<i64: 1, 768>}, {pipeline_mode = #tpu.pipeline_mode<synchronous>, transform_indices = @transform_3, window_bounds = array<i64: 768, 192>}, {pipeline_mode = #tpu.pipeline_mode<synchronous>, transform_indices = @transform_4, window_bounds = array<i64: 1, 192>}, {transform_indices = @transform_5, window_bounds = array<i64: 128, 192>}]} {
    %c0 = arith.constant 0 : index
    %c0_0 = arith.constant 0 : index
    %0 = vector.load %arg1[%c0, %c0_0] : memref<128x192xf32, #tpu.memory_space<vmem>>, vector<128x192xf32>
    %c0_1 = arith.constant 0 : index
    %c0_2 = arith.constant 0 : index
    %1 = vector.load %arg2[%c0_1, %c0_2] : memref<192x768xf32, #tpu.memory_space<vmem>>, vector<192x768xf32>
    %cst = arith.constant dense<0.000000e+00> : vector<128x768xf32>
    %2 = tpu.matmul %0, %1, %cst {dimension_numbers = #tpu.dot_dimension_numbers<[1], [0], [0], [1], [0, 0, 1, 1], [], []>} : vector<128x192xf32>, vector<192x768xf32>, vector<128x768xf32> -> vector<128x768xf32>
    %c0_3 = arith.constant 0 : index
    %c0_4 = arith.constant 0 : index
    %3 = vector.load %arg3[%c0_3, %c0_4] : memref<1x768xf32, #tpu.memory_space<vmem>>, vector<1x768xf32>
    %4 = vector.broadcast %3 : vector<1x768xf32> to vector<128x768xf32>
    %5 = arith.addf %2, %4 : vector<128x768xf32>
    %cst_5 = arith.constant 0.000000e+00 : f32
    %6 = vector.broadcast %cst_5 : f32 to vector<128x768xf32>
    %7 = arith.maximumf %5, %6 : vector<128x768xf32>
    %c0_6 = arith.constant 0 : index
    %c0_7 = arith.constant 0 : index
    %8 = vector.load %arg4[%c0_6, %c0_7] : memref<768x192xf32, #tpu.memory_space<vmem>>, vector<768x192xf32>
    %cst_8 = arith.constant dense<0.000000e+00> : vector<128x192xf32>
    %9 = tpu.matmul %7, %8, %cst_8 {dimension_numbers = #tpu.dot_dimension_numbers<[1], [0], [0], [1], [0, 0, 1, 1], [], []>} : vector<128x768xf32>, vector<768x192xf32>, vector<128x192xf32> -> vector<128x192xf32>
    %c0_9 = arith.constant 0 : index
    %c0_10 = arith.constant 0 : index
    %10 = vector.load %arg5[%c0_9, %c0_10] : memref<1x192xf32, #tpu.memory_space<vmem>>, vector<1x192xf32>
    %11 = vector.broadcast %10 : vector<1x192xf32> to vector<128x192xf32>
    %12 = arith.addf %9, %11 : vector<128x192xf32>
    %c0_11 = arith.constant 0 : index
    %c0_12 = arith.constant 0 : index
    %13 = vector.load %arg6[%c0_11, %c0_12] : memref<128x192xf32, #tpu.memory_space<vmem>>, vector<128x192xf32>
    tpu.vector_store %arg6[%c0_11, %c0_12], %12 {strides = array<i32>} : memref<128x192xf32, #tpu.memory_space<vmem>>, vector<128x192xf32>,
    return
  }
  func.func @transform_0(%arg0: i32) -> (i32, i32) {
    %c0_i32 = arith.constant 0 : i32
    %c0_i32_0 = arith.constant 0 : i32
    return %arg0, %c0_i32 : i32, i32
  }
  func.func @transform_1(%arg0: i32) -> (i32, i32) {
    %c0_i32 = arith.constant 0 : i32
    %c0_i32_0 = arith.constant 0 : i32
    %c0_i32_1 = arith.constant 0 : i32
    return %c0_i32, %c0_i32_0 : i32, i32
  }
  func.func @transform_2(%arg0: i32) -> (i32, i32) {
    %c0_i32 = arith.constant 0 : i32
    %c0_i32_0 = arith.constant 0 : i32
    %c0_i32_1 = arith.constant 0 : i32
    return %c0_i32, %c0_i32_0 : i32, i32
  }
  func.func @transform_3(%arg0: i32) -> (i32, i32) {
    %c0_i32 = arith.constant 0 : i32
    %c0_i32_0 = arith.constant 0 : i32
    %c0_i32_1 = arith.constant 0 : i32
    return %c0_i32, %c0_i32_0 : i32, i32
  }
  func.func @transform_4(%arg0: i32) -> (i32, i32) {
    %c0_i32 = arith.constant 0 : i32
    %c0_i32_0 = arith.constant 0 : i32
    %c0_i32_1 = arith.constant 0 : i32
    return %c0_i32, %c0_i32_0 : i32, i32
  }
  func.func @transform_5(%arg0: i32) -> (i32, i32) {
    %c0_i32 = arith.constant 0 : i32
    %c0_i32_0 = arith.constant 0 : i32
    return %arg0, %c0_i32 : i32, i32
  }
}

</mosaic_0001>

<bundles_post_ra>
// kernel: tpu_custom_call.1
= control target key start
LH: loop header
LB: loop body
LE: loop exit
PB: predicated region body
PF: predicated region fallthrough
CT: control target
= control target key end

     0   :  { %s2387_s18 = smov 0   ;;  %s3959_s0 = inlined_call_operand.vmem [shape: f32[256,192], index: 0, kind: input, shape index: {}]   ;;  %s3960_s1 = inlined_call_operand.vmem [shape: f32[192,768], index: 1, kind: input, shape index: {}]   ;;  %s3961_s2 = inlined_call_operand.vmem [shape: f32[1,768], index: 2, kind: input, shape index: {}]   ;;  %s3962_s3 = inlined_call_operand.vmem [shape: f32[768,192], index: 3, kind: input, shape index: {}]   ;;  %s3963_s4 = inlined_call_operand.vmem [shape: f32[1,192], index: 4, kind: input, shape index: {}]   ;;  %s3964_s5 = inlined_call_operand.vmem [shape: f32[256,192], index: 5, kind: output, shape index: {}]  }
   0x1 LB: > { %s1846_s19 = sadd.s32 4294967295, %s2355_s18   ;;  %p1850_p0 = scmp.ge.s32.totalorder %s2355_s18, 1  ;;  %s2355_s18 = sphi %s2387_s18, %s15_s18  }
   0x2   : > { %p189_p1 = scmp.lt.s32.totalorder %s2355_s18, 3 }
   0x4   : > { %p190_p2 = pnand %p1850_p0, %p189_p1 }
   0x5   : > { %v266_v0 = vld [vmem:[%s3960_s1 + $0x8] sm:$0xff] (!%p190_p2)  ;;  %v272_v1 = vld [vmem:[%s3960_s1 + $0x38] sm:$0xff] (!%p190_p2)  ;;  %v265_v5 = vld [vmem:[%s3960_s1] sm:$0xff] (!%p190_p2)  ;;  %s2529_s14 = sshll.u32 (!%p190_p2), %s1846_s19, 4  ;;  %vm441_vm0 = vcmask (!%p190_p2), 523264  }
   0x6   : > { %193 = sbr.rel (%p190_p2) target bundleno = 615 (0x267), region = 40  ;;  %v268_v2 = vld [vmem:[%s3960_s1 + $0x18] sm:$0xff] (!%p190_p2)  ;;  %v1909_v3 = vpack.c.bf16 (!%p190_p2), %v272_v1, %v266_v0  ;;  %v274_v4 = vld [vmem:[%s3960_s1 + $0x48] sm:$0xff] (!%p190_p2)  ;;  %v271_v6 = vld [vmem:[%s3960_s1 + $0x30] sm:$0xff] (!%p190_p2)  ;;  %p220_p3 = scmp.lt.s32.totalorder (!%p190_p2), %s2529_s14, 31 }
   0x7   : > { %v1957_v7 = vpack.c.bf16 (!%p190_p2), %v274_v4, %v268_v2  ;;  %v1911_v8 = vpack.c.bf16 (!%p190_p2), %v271_v6, %v265_v5  ;;  %v267_v9 = vld [vmem:[%s3960_s1 + $0x10] sm:$0xff] (!%p190_p2)  ;;  %v273_v10 = vld [vmem:[%s3960_s1 + $0x40] sm:$0xff] (!%p190_p2)  ;;  %v278_v11 = vld [vmem:[%s3960_s1 + $0x68] sm:$0xff] (!%p190_p2) }
   0x8   : > { %1910 = vmatprep.subr.bf16.mxu0 (!%p190_p2), %v1909_v3  ;;  %v1959_v12 = vpack.c.bf16 (!%p190_p2), %v273_v10, %v267_v9  ;;  %v284_v13 = vld [vmem:[%s3960_s1 + $0x98] sm:$0xff] (!%p190_p2)  ;;  %v286_v15 = vld [vmem:[%s3960_s1 + $0xa8] sm:$0xff] (!%p190_p2)  ;;  %v277_v18 = vld [vmem:[%s3960_s1 + $0x60] sm:$0xff] (!%p190_p2) }
   0x9   : > { %v280_v14 = vld [vmem:[%s3960_s1 + $0x78] sm:$0xff] (!%p190_p2)  ;;  %1958 = vmatprep.subr.bf16.mxu1 (!%p190_p2), %v1957_v7  ;;  %1912 = vmatpush1.bf16.msra.mxu0 (!%p190_p2), %v1911_v8  ;;  %v1913_v16 = vpack.c.bf16 (!%p190_p2), %v284_v13, %v278_v11  ;;  %v283_v19 = vld [vmem:[%s3960_s1 + $0x90] sm:$0xff] (!%p190_p2)  ;;  %v285_v22 = vld [vmem:[%s3960_s1 + $0xa0] sm:$0xff] (!%p190_p2) }
   0xa   : > { %v1961_v17 = vpack.c.bf16 (!%p190_p2), %v286_v15, %v280_v14  ;;  %v279_v20 = vld [vmem:[%s3960_s1 + $0x70] sm:$0xff] (!%p190_p2)  ;;  %1960 = vmatpush1.bf16.msra.mxu1 (!%p190_p2), %v1959_v12  ;;  %v1915_v21 = vpack.c.bf16 (!%p190_p2), %v283_v19, %v277_v18  ;;  %v290_v23 = vld [vmem:[%s3960_s1 + $0xc8] sm:$0xff] (!%p190_p2)  ;;  %v296_v24 = vld [vmem:[%s3960_s1 + $0xf8] sm:$0xff] (!%p190_p2) }
   0xb   : > { %1914 = vmatprep.subr.bf16.mxu0 (!%p190_p2), %v1913_v16  ;;  %v1963_v25 = vpack.c.bf16 (!%p190_p2), %v285_v22, %v279_v20  ;;  %v1917_v26 = vpack.c.bf16 (!%p190_p2), %v296_v24, %v290_v23  ;;  %v292_v27 = vld [vmem:[%s3960_s1 + $0xd8] sm:$0xff] (!%p190_p2)  ;;  %v298_v28 = vld [vmem:[%s3960_s1 + $0x108] sm:$0xff] (!%p190_p2)  ;;  %v289_v29 = vld [vmem:[%s3960_s1 + $0xc0] sm:$0xff] (!%p190_p2) }
   0xc   : > { %1962 = vmatprep.subr.bf16.mxu1 (!%p190_p2), %v1961_v17  ;;  %v1965_v30 = vpack.c.bf16 (!%p190_p2), %v298_v28, %v292_v27  ;;  %v295_v31 = vld [vmem:[%s3960_s1 + $0xf0] sm:$0xff] (!%p190_p2)  ;;  %v297_v33 = vld [vmem:[%s3960_s1 + $0x100] sm:$0xff] (!%p190_p2)  ;;  %v302_v35 = vld [vmem:[%s3960_s1 + $0x128] sm:$0xff] (!%p190_p2) }
   0xd   : > { %v291_v32 = vld [vmem:[%s3960_s1 + $0xd0] sm:$0xff]  ;;  %1916 = vmatpush1.bf16.msra.mxu0 %v1915_v21  ;;  %v1919_v34 = vpack.c.bf16 %v295_v31, %v289_v29  ;;  %v308_v36 = vld [vmem:[%s3960_s1 + $0x158] sm:$0xff]  ;;  %v310_v40 = vld [vmem:[%s3960_s1 + $0x168] sm:$0xff]  ;;  %s3966_s14 = smov (!%p220_p3, %s2529_s14), 31 }
   0xe   : > { %v304_v37 = vld [vmem:[%s3960_s1 + $0x138] sm:$0xff]  ;;  %1964 = vmatpush1.bf16.msra.mxu1 %v1963_v25  ;;  %1918 = vmatprep.subr.bf16.mxu0 %v1917_v26  ;;  %v1967_v38 = vpack.c.bf16 %v297_v33, %v291_v32  ;;  %v1921_v39 = vpack.c.bf16 %v308_v36, %v302_v35  ;;  %v301_v41 = vld [vmem:[%s3960_s1 + $0x120] sm:$0xff]  ;;  %v307_v42 = vld [vmem:[%s3960_s1 + $0x150] sm:$0xff]  ;;  %s1907_s12 = sshll.u32 %s3966_s14, 4 }
   0xf   : > { %1966 = vmatprep.subr.bf16.mxu1 %v1965_v30  ;;  %v1969_v43 = vpack.c.bf16 %v310_v40, %v304_v37  ;;  %v303_v44 = vld [vmem:[%s3960_s1 + $0x130] sm:$0xff]  ;;  %v309_v45 = vld [vmem:[%s3960_s1 + $0x160] sm:$0xff]  ;;  %v314_v46 = vld [vmem:[%s3960_s1 + $0x188] sm:$0xff]  ;;  %v1923_v50 = vpack.c.bf16 %v307_v42, %v301_v41  ;;  %s2624_s27 = scalar_lea.vmem %s3959_s0, %s1907_s12  ;;  %s3854_s25 = scalar_lea.vmem %s3964_s5, %s1907_s12 }
  0x10   : > { %v320_v47 = vld [vmem:[%s3960_s1 + $0x1b8] sm:$0xff]  ;;  %v322_v49 = vld [vmem:[%s3960_s1 + $0x1c8] sm:$0xff]  ;;  %v1971_v51 = vpack.c.bf16 %v309_v45, %v303_v44  ;;  %v313_v53 = vld [vmem:[%s3960_s1 + $0x180] sm:$0xff] }
  0x11   : > { %v316_v48 = vld [vmem:[%s3960_s1 + $0x198] sm:$0xff]  ;;  %1920 = vmatpush1.bf16.msra.mxu0 %v1919_v34  ;;  %v1925_v52 = vpack.c.bf16 %v320_v47, %v314_v46  ;;  %v319_v54 = vld [vmem:[%s3960_s1 + $0x1b0] sm:$0xff]  ;;  %v321_v57 = vld [vmem:[%s3960_s1 + $0x1c0] sm:$0xff] }
  0x12   : > { %1968 = vmatpush1.bf16.msra.mxu1 %v1967_v38  ;;  %1922 = vmatprep.subr.bf16.mxu0 %v1921_v39  ;;  %v315_v55 = vld [vmem:[%s3960_s1 + $0x190] sm:$0xff]  ;;  %v1973_v56 = vpack.c.bf16 %v322_v49, %v316_v48  ;;  %v326_v58 = vld [vmem:[%s3960_s1 + $0x1e8] sm:$0xff]  ;;  %v332_v59 = vld [vmem:[%s3960_s1 + $0x218] sm:$0xff]  ;;  %v1927_v62 = vpack.c.bf16 %v319_v54, %v313_v53 }
  0x13   : > { %1970 = vmatprep.subr.bf16.mxu1 %v1969_v43  ;;  %v328_v60 = vld [vmem:[%s3960_s1 + $0x1f8] sm:$0xff]  ;;  %v334_v61 = vld [vmem:[%s3960_s1 + $0x228] sm:$0xff]  ;;  %v1975_v63 = vpack.c.bf16 %v321_v57, %v315_v55  ;;  %v1929_v0 = vpack.c.bf16 %v332_v59, %v326_v58  ;;  %v325_v1 = vld [vmem:[%s3960_s1 + $0x1e0] sm:$0xff] }
  0x14   : > { %v331_v2 = vld [vmem:[%s3960_s1 + $0x210] sm:$0xff]  ;;  %v1977_v4 = vpack.c.bf16 %v334_v61, %v328_v60  ;;  %v333_v5 = vld [vmem:[%s3960_s1 + $0x220] sm:$0xff]  ;;  %v338_v6 = vld [vmem:[%s3960_s1 + $0x248] sm:$0xff] }
  0x15   : > { %1924 = vmatpush1.bf16.msra.mxu0 %v1923_v50  ;;  %v327_v3 = vld [vmem:[%s3960_s1 + $0x1f0] sm:$0xff]  ;;  %v344_v7 = vld [vmem:[%s3960_s1 + $0x278] sm:$0xff]  ;;  %v346_v9 = vld [vmem:[%s3960_s1 + $0x288] sm:$0xff]  ;;  %v1931_v10 = vpack.c.bf16 %v331_v2, %v325_v1 }
  0x16   : > { %1972 = vmatpush1.bf16.msra.mxu1 %v1971_v51  ;;  %1926 = vmatprep.subr.bf16.mxu0 %v1925_v52  ;;  %v340_v8 = vld [vmem:[%s3960_s1 + $0x258] sm:$0xff]  ;;  %v1979_v11 = vpack.c.bf16 %v333_v5, %v327_v3  ;;  %v1933_v12 = vpack.c.bf16 %v344_v7, %v338_v6  ;;  %v337_v13 = vld [vmem:[%s3960_s1 + $0x240] sm:$0xff]  ;;  %v343_v14 = vld [vmem:[%s3960_s1 + $0x270] sm:$0xff] }
  0x17   : > { %1974 = vmatprep.subr.bf16.mxu1 %v1973_v56  ;;  %v339_v15 = vld [vmem:[%s3960_s1 + $0x250] sm:$0xff]  ;;  %v1981_v16 = vpack.c.bf16 %v346_v9, %v340_v8  ;;  %v345_v17 = vld [vmem:[%s3960_s1 + $0x280] sm:$0xff]  ;;  %v350_v18 = vld [vmem:[%s3960_s1 + $0x2a8] sm:$0xff]  ;;  %v1935_v22 = vpack.c.bf16 %v343_v14, %v337_v13 }
  0x18   : > { %v356_v19 = vld [vmem:[%s3960_s1 + $0x2d8] sm:$0xff]  ;;  %v358_v21 = vld [vmem:[%s3960_s1 + $0x2e8] sm:$0xff]  ;;  %v1983_v23 = vpack.c.bf16 %v345_v17, %v339_v15  ;;  %v349_v25 = vld [vmem:[%s3960_s1 + $0x2a0] sm:$0xff] }
  0x19   : > { %1928 = vmatpush1.bf16.msra.mxu0 %v1927_v62  ;;  %v352_v20 = vld [vmem:[%s3960_s1 + $0x2b8] sm:$0xff]  ;;  %v1937_v24 = vpack.c.bf16 %v356_v19, %v350_v18  ;;  %v355_v26 = vld [vmem:[%s3960_s1 + $0x2d0] sm:$0xff]  ;;  %v357_v29 = vld [vmem:[%s3960_s1 + $0x2e0] sm:$0xff] }
  0x1a   : > { %1976 = vmatpush1.bf16.msra.mxu1 %v1975_v63  ;;  %1930 = vmatprep.subr.bf16.mxu0 %v1929_v0  ;;  %v351_v27 = vld [vmem:[%s3960_s1 + $0x2b0] sm:$0xff]  ;;  %v1985_v28 = vpack.c.bf16 %v358_v21, %v352_v20  ;;  %v362_v30 = vld [vmem:[%s3960_s1 + $0x308] sm:$0xff]  ;;  %v368_v31 = vld [vmem:[%s3960_s1 + $0x338] sm:$0xff]  ;;  %v1939_v34 = vpack.c.bf16 %v355_v26, %v349_v25 }
  0x1b   : > { %1978 = vmatprep.subr.bf16.mxu1 %v1977_v4  ;;  %v364_v32 = vld [vmem:[%s3960_s1 + $0x318] sm:$0xff]  ;;  %v370_v33 = vld [vmem:[%s3960_s1 + $0x348] sm:$0xff]  ;;  %v1987_v35 = vpack.c.bf16 %v357_v29, %v351_v27  ;;  %v1941_v36 = vpack.c.bf16 %v368_v31, %v362_v30  ;;  %v361_v37 = vld [vmem:[%s3960_s1 + $0x300] sm:$0xff] }
  0x1c   : > { %v367_v38 = vld [vmem:[%s3960_s1 + $0x330] sm:$0xff]  ;;  %v1989_v40 = vpack.c.bf16 %v370_v33, %v364_v32  ;;  %v369_v41 = vld [vmem:[%s3960_s1 + $0x340] sm:$0xff]  ;;  %v374_v42 = vld [vmem:[%s3960_s1 + $0x368] sm:$0xff] }
  0x1d   : > { %1932 = vmatpush1.bf16.msra.mxu0 %v1931_v10  ;;  %v363_v39 = vld [vmem:[%s3960_s1 + $0x310] sm:$0xff]  ;;  %v380_v43 = vld [vmem:[%s3960_s1 + $0x398] sm:$0xff]  ;;  %v382_v45 = vld [vmem:[%s3960_s1 + $0x3a8] sm:$0xff]  ;;  %v1943_v46 = vpack.c.bf16 %v367_v38, %v361_v37 }
  0x1e   : > { %1980 = vmatpush1.bf16.msra.mxu1 %v1979_v11  ;;  %1934 = vmatprep.subr.bf16.mxu0 %v1933_v12  ;;  %v376_v44 = vld [vmem:[%s3960_s1 + $0x378] sm:$0xff]  ;;  %v2642_v47 = vld [vmem:[%s2624_s27 + $0x8] sm:$0xff]  ;;  %v1991_v48 = vpack.c.bf16 %v369_v41, %v363_v39  ;;  %v1945_v49 = vpack.c.bf16 %v380_v43, %v374_v42  ;;  %v373_v50 = vld [vmem:[%s3960_s1 + $0x360] sm:$0xff] }
  0x1f   : > { %1982 = vmatprep.subr.bf16.mxu1 %v1981_v16  ;;  %v379_v51 = vld [vmem:[%s3960_s1 + $0x390] sm:$0xff]  ;;  %v1993_v53 = vpack.c.bf16 %v382_v45, %v376_v44  ;;  %v381_v54 = vld [vmem:[%s3960_s1 + $0x3a0] sm:$0xff]  ;;  %v386_v55 = vld [vmem:[%s3960_s1 + $0x3c8] sm:$0xff]  ;;  %1857 = vmatprep.mubr.msk.f32.mxu0 %vm441_vm0, %v2642_v47 }
  0x20   : > { %v375_v52 = vld [vmem:[%s3960_s1 + $0x370] sm:$0xff]  ;;  %v392_v56 = vld [vmem:[%s3960_s1 + $0x3f8] sm:$0xff]  ;;  %v394_v58 = vld [vmem:[%s3960_s1 + $0x408] sm:$0xff]  ;;  %1873 = vmatprep.mubr.msk.f32.mxu1 %vm441_vm0, %v2642_v47  ;;  %v1947_v59 = vpack.c.bf16 %v379_v51, %v373_v50 }
  0x21   : > { %1936 = vmatpush1.bf16.msra.mxu0 %v1935_v22  ;;  %v388_v57 = vld [vmem:[%s3960_s1 + $0x3d8] sm:$0xff]  ;;  %v1995_v60 = vpack.c.bf16 %v381_v54, %v375_v52  ;;  %v1949_v61 = vpack.c.bf16 %v392_v56, %v386_v55  ;;  %v385_v62 = vld [vmem:[%s3960_s1 + $0x3c0] sm:$0xff]  ;;  %v391_v63 = vld [vmem:[%s3960_s1 + $0x3f0] sm:$0xff] }
  0x22   : > { %1984 = vmatpush1.bf16.msra.mxu1 %v1983_v23  ;;  %1938 = vmatprep.subr.bf16.mxu0 %v1937_v24  ;;  %v387_v0 = vld [vmem:[%s3960_s1 + $0x3d0] sm:$0xff]  ;;  %v1997_v1 = vpack.c.bf16 %v394_v58, %v388_v57  ;;  %v393_v2 = vld [vmem:[%s3960_s1 + $0x400] sm:$0xff]  ;;  %v398_v3 = vld [vmem:[%s3960_s1 + $0x428] sm:$0xff]  ;;  %v1951_v7 = vpack.c.bf16 %v391_v63, %v385_v62 }
  0x23   : > { %1986 = vmatprep.subr.bf16.mxu1 %v1985_v28  ;;  %v404_v4 = vld [vmem:[%s3960_s1 + $0x458] sm:$0xff]  ;;  %v406_v6 = vld [vmem:[%s3960_s1 + $0x468] sm:$0xff]  ;;  %v1999_v8 = vpack.c.bf16 %v393_v2, %v387_v0  ;;  %v397_v10 = vld [vmem:[%s3960_s1 + $0x420] sm:$0xff] }
  0x24   : > { %v400_v5 = vld [vmem:[%s3960_s1 + $0x438] sm:$0xff]  ;;  %v1953_v9 = vpack.c.bf16 %v404_v4, %v398_v3  ;;  %v403_v11 = vld [vmem:[%s3960_s1 + $0x450] sm:$0xff]  ;;  %v405_v14 = vld [vmem:[%s3960_s1 + $0x460] sm:$0xff] }
  0x25   : > { %1940 = vmatpush1.bf16.msra.mxu0 %v1939_v34  ;;  %v399_v12 = vld [vmem:[%s3960_s1 + $0x430] sm:$0xff]  ;;  %v2001_v13 = vpack.c.bf16 %v406_v6, %v400_v5  ;;  %v270_v15 = vld [vmem:[%s3960_s1 + $0x28] sm:$0xff]  ;;  %v276_v16 = vld [vmem:[%s3960_s1 + $0x58] sm:$0xff]  ;;  %v1955_v17 = vpack.c.bf16 %v403_v11, %v397_v10 }
  0x26   : > { %1988 = vmatpush1.bf16.msra.mxu1 %v1987_v35  ;;  %1942 = vmatprep.subr.bf16.mxu0 %v1941_v36  ;;  %v2003_v18 = vpack.c.bf16 %v405_v14, %v399_v12  ;;  %v2005_v19 = vpack.c.bf16 %v276_v16, %v270_v15  ;;  %v269_v20 = vld [vmem:[%s3960_s1 + $0x20] sm:$0xff]  ;;  %v275_v21 = vld [vmem:[%s3960_s1 + $0x50] sm:$0xff]  ;;  %v282_v22 = vld [vmem:[%s3960_s1 + $0x88] sm:$0xff] }
  0x27   : > { %1990 = vmatprep.subr.bf16.mxu1 %v1989_v40  ;;  %v288_v23 = vld [vmem:[%s3960_s1 + $0xb8] sm:$0xff]  ;;  %v2727_v24 = vld [vmem:[%s2624_s27] sm:$0xff]  ;;  %v2007_v25 = vpack.c.bf16 %v275_v21, %v269_v20  ;;  %v287_v29 = vld [vmem:[%s3960_s1 + $0xb0] sm:$0xff] }
  0x28   : > { %v2730_v26 = vld [vmem:[%s2624_s27 + $0x18] sm:$0xff]  ;;  %v2009_v27 = vpack.c.bf16 %v288_v23, %v282_v22  ;;  %v281_v28 = vld [vmem:[%s3960_s1 + $0x80] sm:$0xff]  ;;  %v294_v30 = vld [vmem:[%s3960_s1 + $0xe8] sm:$0xff] }
  0x29   : > { %1944 = vmatpush1.bf16.msra.mxu0 %v1943_v46  ;;  %v300_v31 = vld [vmem:[%s3960_s1 + $0x118] sm:$0xff]  ;;  %v2747_v32 = vld [vmem:[%s2624_s27 + $0x10] sm:$0xff]  ;;  %v2754_v33 = vld [vmem:[%s2624_s27 + $0x28] sm:$0xff]  ;;  %v2011_v34 = vpack.c.bf16 %v287_v29, %v281_v28 }
  0x2a   : > { %1992 = vmatpush1.bf16.msra.mxu1 %v1991_v48  ;;  %1946 = vmatprep.subr.bf16.mxu0 %v1945_v49  ;;  %v2013_v35 = vpack.c.bf16 %v300_v31, %v294_v30  ;;  %v293_v36 = vld [vmem:[%s3960_s1 + $0xe0] sm:$0xff]  ;;  %v299_v37 = vld [vmem:[%s3960_s1 + $0x110] sm:$0xff]  ;;  %v306_v38 = vld [vmem:[%s3960_s1 + $0x148] sm:$0xff] }
  0x2b   : > { %1994 = vmatprep.subr.bf16.mxu1 %v1993_v53  ;;  %v312_v39 = vld [vmem:[%s3960_s1 + $0x178] sm:$0xff]  ;;  %v2773_v40 = vld [vmem:[%s2624_s27 + $0x20] sm:$0xff]  ;;  %v2015_v42 = vpack.c.bf16 %v299_v37, %v293_v36  ;;  %v311_v45 = vld [vmem:[%s3960_s1 + $0x170] sm:$0xff] }
  0x2c   : > { %v2778_v41 = vld [vmem:[%s2624_s27 + $0x38] sm:$0xff]  ;;  %v2017_v43 = vpack.c.bf16 %v312_v39, %v306_v38  ;;  %v305_v44 = vld [vmem:[%s3960_s1 + $0x140] sm:$0xff]  ;;  %v318_v46 = vld [vmem:[%s3960_s1 + $0x1a8] sm:$0xff] }
  0x2d   : > { %1948 = vmatpush1.bf16.msra.mxu0 %v1947_v59  ;;  %v324_v48 = vld [vmem:[%s3960_s1 + $0x1d8] sm:$0xff]  ;;  %v1134_v49 = vld [vmem:[%s3962_s3 + $0x208] sm:$0xff]  ;;  %v2803_v51 = vld [vmem:[%s2624_s27 + $0x30] sm:$0xff]  ;;  %v2019_v55 = vpack.c.bf16 %v311_v45, %v305_v44 }
  0x2e   : > { %1996 = vmatpush1.bf16.msra.mxu1 %v1995_v60  ;;  %1950 = vmatprep.subr.bf16.mxu0 %v1949_v61  ;;  %v1136_v50 = vld [vmem:[%s3962_s3 + $0x218] sm:$0xff]  ;;  %v2806_v52 = vld [vmem:[%s2624_s27 + $0x48] sm:$0xff]  ;;  %v1133_v54 = vld [vmem:[%s3962_s3 + $0x200] sm:$0xff]  ;;  %v2021_v59 = vpack.c.bf16 %v324_v48, %v318_v46 }
  0x2f   : > { %1998 = vmatprep.subr.bf16.mxu1 %v1997_v1  ;;  %v2117_v53 = vpack.c.bf16 %v1136_v50, %v1134_v49  ;;  %v317_v56 = vld [vmem:[%s3960_s1 + $0x1a0] sm:$0xff]  ;;  %v323_v57 = vld [vmem:[%s3960_s1 + $0x1d0] sm:$0xff]  ;;  %v330_v60 = vld [vmem:[%s3960_s1 + $0x208] sm:$0xff] }
  0x30   : > { %v1135_v58 = vld [vmem:[%s3962_s3 + $0x210] sm:$0xff]  ;;  %v1138_v62 = vld [vmem:[%s3962_s3 + $0x228] sm:$0xff]  ;;  %v1140_v63 = vld [vmem:[%s3962_s3 + $0x238] sm:$0xff] }
  0x31   : > { %1952 = vmatpush1.bf16.msra.mxu0 %v1951_v7  ;;  %v2119_v61 = vpack.c.bf16 %v1135_v58, %v1133_v54  ;;  %v336_v0 = vld [vmem:[%s3960_s1 + $0x238] sm:$0xff]  ;;  %v2121_v1 = vpack.c.bf16 %v1140_v63, %v1138_v62  ;;  %v1137_v2 = vld [vmem:[%s3962_s3 + $0x220] sm:$0xff]  ;;  %v1139_v3 = vld [vmem:[%s3962_s3 + $0x230] sm:$0xff]  ;;  %v2023_v7 = vpack.c.bf16 %v323_v57, %v317_v56 }
  0x32   : > { %2000 = vmatpush1.bf16.msra.mxu1 %v1999_v8  ;;  %1954 = vmatprep.subr.bf16.mxu0 %v1953_v9  ;;  %v2845_v4 = vld [vmem:[%s2624_s27 + $0x40] sm:$0xff]  ;;  %v1142_v5 = vld [vmem:[%s3962_s3 + $0x248] sm:$0xff]  ;;  %v2853_v6 = vld [vmem:[%s2624_s27 + $0x58] sm:$0xff]  ;;  %v2025_v9 = vpack.c.bf16 %v336_v0, %v330_v60 }
  0x33   : > { %2002 = vmatprep.subr.bf16.mxu1 %v2001_v13  ;;  %v1144_v8 = vld [vmem:[%s3962_s3 + $0x258] sm:$0xff]  ;;  %v329_v10 = vld [vmem:[%s3960_s1 + $0x200] sm:$0xff]  ;;  %v335_v11 = vld [vmem:[%s3960_s1 + $0x230] sm:$0xff]  ;;  %v2123_v13 = vpack.c.bf16 %v1139_v3, %v1137_v2 }
  0x34   : > { %v342_v12 = vld [vmem:[%s3960_s1 + $0x268] sm:$0xff]  ;;  %v348_v14 = vld [vmem:[%s3960_s1 + $0x298] sm:$0xff]  ;;  %v2125_v15 = vpack.c.bf16 %v1144_v8, %v1142_v5  ;;  %v1141_v16 = vld [vmem:[%s3962_s3 + $0x240] sm:$0xff]  ;;  %v2027_v22 = vpack.c.bf16 %v335_v11, %v329_v10 }
  0x35   : > { %1956 = vmatpush1.bf16.msra.mxu0 %v1955_v17  ;;  %v1143_v17 = vld [vmem:[%s3962_s3 + $0x250] sm:$0xff]  ;;  %v1148_v20 = vld [vmem:[%s3962_s3 + $0x278] sm:$0xff]  ;;  %v2892_v21 = vld [vmem:[%s2624_s27 + $0x68] sm:$0xff]  ;;  %v2029_v23 = vpack.c.bf16 %v348_v14, %v342_v12 }
  0x36   : > { %2004 = vmatpush1.bf16.msra.mxu1 %v2003_v18  ;;  %2006 = vmatprep.subr.bf16.mxu0 %v2005_v19  ;;  %v2881_v18 = vld [vmem:[%s2624_s27 + $0x50] sm:$0xff]  ;;  %v1146_v19 = vld [vmem:[%s3962_s3 + $0x268] sm:$0xff]  ;;  %v2127_v29 = vpack.c.bf16 %v1143_v17, %v1141_v16  ;;  %v360_v30 = vld [vmem:[%s3960_s1 + $0x2f8] sm:$0xff] }
  0x37   : > { %2118 = vmatprep.subr.bf16.mxu1 %v2117_v53  ;;  %v354_v28 = vld [vmem:[%s3960_s1 + $0x2c8] sm:$0xff]  ;;  %v2129_v31 = vpack.c.bf16 %v1148_v20, %v1146_v19  ;;  %v2917_v36 = vld [vmem:[%s2624_s27 + $0x60] sm:$0xff]  ;;  %v1152_v38 = vld [vmem:[%s3962_s3 + $0x298] sm:$0xff] }
  0x38   : > { %555 = vmatmul.mubr.f32.vlgmr.msra.gmra.mrb[0].mxu0 %v2727_v24  ;;  %v1150_v37 = vld [vmem:[%s3962_s3 + $0x288] sm:$0xff]  ;;  %v2928_v39 = vld [vmem:[%s2624_s27 + $0x78] sm:$0xff]  ;;  %v353_v44 = vld [vmem:[%s3960_s1 + $0x2c0] sm:$0xff] }
  0x39   : > { %716 = vmatmul.mubr.f32.vlgmr.msra.gmra.mrb[0].mxu1 %v2727_v24  ;;  %2008 = vmatpush1.bf16.msra.mxu0 %v2007_v25  ;;  %v341_v25 = vld [vmem:[%s3960_s1 + $0x260] sm:$0xff]  ;;  %v359_v45 = vld [vmem:[%s3960_s1 + $0x2f0] sm:$0xff]  ;;  %v366_v46 = vld [vmem:[%s3960_s1 + $0x328] sm:$0xff]  ;;  %v2133_v50 = vpack.c.bf16 %v1152_v38, %v1150_v37 }
  0x3a   : > { %1858 = vmatprep.mubr.msk.f32.mxu0 %vm441_vm0, %v2730_v26  ;;  %1874 = vmatprep.mubr.msk.f32.mxu1 %vm441_vm0, %v2730_v26  ;;  %v372_v49 = vld [vmem:[%s3960_s1 + $0x358] sm:$0xff]  ;;  %v1149_v53 = vld [vmem:[%s3962_s3 + $0x280] sm:$0xff]  ;;  %v1151_v54 = vld [vmem:[%s3962_s3 + $0x290] sm:$0xff] }
  0x3b   : > { %2010 = vmatprep.subr.bf16.mxu0 %v2009_v27  ;;  %2120 = vmatpush1.bf16.msra.mxu1 %v2119_v61  ;;  %v347_v27 = vld [vmem:[%s3960_s1 + $0x290] sm:$0xff]  ;;  %v1154_v56 = vld [vmem:[%s3962_s3 + $0x2a8] sm:$0xff]  ;;  %v1156_v57 = vld [vmem:[%s3962_s3 + $0x2b8] sm:$0xff]  ;;  %v2037_v60 = vpack.c.bf16 %v372_v49, %v366_v46  ;;  %v2135_v0 = vpack.c.bf16 %v1151_v54, %v1149_v53 }
  0x3c   : > { %561 = vmatmul.mubr.f32.gmra.mrb[2].mxu0 %v2747_v32  ;;  %2122 = vmatprep.subr.bf16.mxu1 %v2121_v1  ;;  %v2964_v58 = vld [vmem:[%s2624_s27 + $0x88] sm:$0xff]  ;;  %v365_v61 = vld [vmem:[%s3960_s1 + $0x320] sm:$0xff]  ;;  %v371_v62 = vld [vmem:[%s3960_s1 + $0x350] sm:$0xff]  ;;  %v2137_v2 = vpack.c.bf16 %v1156_v57, %v1154_v56 }
  0x3d   : > { %722 = vmatmul.mubr.f32.gmra.mrb[2].mxu1 %v2747_v32  ;;  %1859 = vmatprep.mubr.msk.f32.mxu0 %vm441_vm0, %v2754_v33  ;;  %v378_v63 = vld [vmem:[%s3960_s1 + $0x388] sm:$0xff]  ;;  %v384_v1 = vld [vmem:[%s3960_s1 + $0x3b8] sm:$0xff]  ;;  %v1153_v3 = vld [vmem:[%s3962_s3 + $0x2a0] sm:$0xff]  ;;  %v2039_v11 = vpack.c.bf16 %v371_v62, %v365_v61 }
  0x3e   : > { %1875 = vmatprep.mubr.msk.f32.mxu1 %vm441_vm0, %v2754_v33  ;;  %2012 = vmatpush1.bf16.msra.mxu0 %v2011_v34  ;;  %v1145_v34 = vld [vmem:[%s3962_s3 + $0x260] sm:$0xff]  ;;  %v1155_v5 = vld [vmem:[%s3962_s3 + $0x2b0] sm:$0xff]  ;;  %v1158_v8 = vld [vmem:[%s3962_s3 + $0x2c8] sm:$0xff]  ;;  %v2041_v12 = vpack.c.bf16 %v384_v1, %v378_v63 }
  0x3f   : > { %2014 = vmatprep.subr.bf16.mxu0 %v2013_v35  ;;  %2124 = vmatpush1.bf16.msra.mxu1 %v2123_v13  ;;  %v1147_v35 = vld [vmem:[%s3962_s3 + $0x270] sm:$0xff]  ;;  %v3000_v10 = vld [vmem:[%s2624_s27 + $0x98] sm:$0xff]  ;;  %v377_v13 = vld [vmem:[%s3960_s1 + $0x380] sm:$0xff]  ;;  %v2139_v16 = vpack.c.bf16 %v1155_v5, %v1153_v3 }
  0x40   : > { %567 = vmatmul.mubr.f32.gmra.mrb[4].mxu0 %v2773_v40  ;;  %2126 = vmatprep.subr.bf16.mxu1 %v2125_v15  ;;  %v2131_v48 = vpack.c.bf16 %v1147_v35, %v1145_v34  ;;  %v383_v14 = vld [vmem:[%s3960_s1 + $0x3b0] sm:$0xff]  ;;  %v390_v15 = vld [vmem:[%s3960_s1 + $0x3e8] sm:$0xff]  ;;  %v396_v17 = vld [vmem:[%s3960_s1 + $0x418] sm:$0xff] }
  0x41   : > { %728 = vmatmul.mubr.f32.gmra.mrb[4].mxu1 %v2773_v40  ;;  %1860 = vmatprep.mubr.msk.f32.mxu0 %vm441_vm0, %v2778_v41  ;;  %v1157_v20 = vld [vmem:[%s3962_s3 + $0x2c0] sm:$0xff]  ;;  %v395_v34 = vld [vmem:[%s3960_s1 + $0x410] sm:$0xff]  ;;  %v402_v35 = vld [vmem:[%s3960_s1 + $0x448] sm:$0xff] }
  0x42   : > { %1876 = vmatprep.mubr.msk.f32.mxu1 %vm441_vm0, %v2778_v41  ;;  %2016 = vmatpush1.bf16.msra.mxu0 %v2015_v42  ;;  %v2031_v42 = vpack.c.bf16 %v347_v27, %v341_v25  ;;  %v1162_v25 = vld [vmem:[%s3962_s3 + $0x2e8] sm:$0xff]  ;;  %v1164_v27 = vld [vmem:[%s3962_s3 + $0x2f8] sm:$0xff]  ;;  %v401_v54 = vld [vmem:[%s3960_s1 + $0x440] sm:$0xff] }
  0x43   : > { %2018 = vmatprep.subr.bf16.mxu0 %v2017_v43  ;;  %v2033_v43 = vpack.c.bf16 %v360_v30, %v354_v28  ;;  %2128 = vmatpush1.bf16.msra.mxu1 %v2127_v29  ;;  %v3036_v28 = vld [vmem:[%s2624_s27 + $0xa8] sm:$0xff]  ;;  %v2043_v29 = vpack.c.bf16 %v383_v14, %v377_v13  ;;  %v2045_v30 = vpack.c.bf16 %v396_v17, %v390_v15  ;;  %v408_v38 = vld [vmem:[%s3960_s1 + $0x478] sm:$0xff]  ;;  %v407_v56 = vld [vmem:[%s3960_s1 + $0x470] sm:$0xff] }
  0x44   : > { %573 = vmatmul.mubr.f32.gmra.mrb[6].mxu0 %v2803_v51  ;;  %2130 = vmatprep.subr.bf16.mxu1 %v2129_v31  ;;  %v389_v31 = vld [vmem:[%s3960_s1 + $0x3e0] sm:$0xff]  ;;  %v1166_v46 = vld [vmem:[%s3962_s3 + $0x308] sm:$0xff]  ;;  %v3072_v49 = vld [vmem:[%s2624_s27 + $0xb8] sm:$0xff]  ;;  %v2049_v53 = vpack.c.bf16 %v408_v38, %v402_v35  ;;  %v2051_v5 = vpack.c.bf16 %v407_v56, %v401_v54 }
  0x45   : > { %734 = vmatmul.mubr.f32.gmra.mrb[6].mxu1 %v2803_v51  ;;  %1861 = vmatprep.mubr.msk.f32.mxu0 %vm441_vm0, %v2806_v52  ;;  %v1070_v57 = vld [vmem:[%s3962_s3 + $0x8] sm:$0xff]  ;;  %v1165_v62 = vld [vmem:[%s3962_s3 + $0x300] sm:$0xff]  ;;  %v1167_v63 = vld [vmem:[%s3962_s3 + $0x310] sm:$0xff] }
  0x46   : > { %1877 = vmatprep.mubr.msk.f32.mxu1 %vm441_vm0, %v2806_v52  ;;  %2020 = vmatpush1.bf16.msra.mxu0 %v2019_v55  ;;  %v2953_v55 = vld [vmem:[%s2624_s27 + $0x70] sm:$0xff]  ;;  %v1170_v1 = vld [vmem:[%s3962_s3 + $0x328] sm:$0xff]  ;;  %v3121_v14 = vld [vmem:[%s2624_s27 + $0xc0] sm:$0xff] }
  0x47   : > { %2022 = vmatprep.subr.bf16.mxu0 %v2021_v59  ;;  %v2035_v59 = vpack.c.bf16 %v359_v45, %v353_v44  ;;  %2132 = vmatpush1.bf16.msra.mxu1 %v2131_v48  ;;  %v1163_v44 = vld [vmem:[%s3962_s3 + $0x2f0] sm:$0xff]  ;;  %v3061_v45 = vld [vmem:[%s2624_s27 + $0xa0] sm:$0xff]  ;;  %v1168_v48 = vld [vmem:[%s3962_s3 + $0x318] sm:$0xff] }
  0x48   : > { %579 = vmatmul.mubr.f32.gmra.mrb[8].mxu0 %v2845_v4  ;;  %2134 = vmatprep.subr.bf16.mxu1 %v2133_v50  ;;  %v2047_v50 = vpack.c.bf16 %v395_v34, %v389_v31  ;;  %v2149_v61 = vpack.c.bf16 %v1168_v48, %v1166_v46  ;;  %v3108_v3 = vld [vmem:[%s2624_s27 + $0xc8] sm:$0xff]  ;;  %v1171_v13 = vld [vmem:[%s3962_s3 + $0x330] sm:$0xff]  ;;  %v3132_v17 = vld [vmem:[%s2624_s27 + $0xd8] sm:$0xff] }
  0x49   : > { %740 = vmatmul.mubr.f32.gmra.mrb[8].mxu1 %v2845_v4  ;;  %1862 = vmatprep.mubr.msk.f32.mxu0 %vm441_vm0, %v2853_v6  ;;  %v1174_v15 = vld [vmem:[%s3962_s3 + $0x348] sm:$0xff]  ;;  %v1179_v38 = vld [vmem:[%s3962_s3 + $0x370] sm:$0xff]  ;;  %v3180_v46 = vld [vmem:[%s2624_s27 + $0xf8] sm:$0xff] }
  0x4a   : > { %1878 = vmatprep.mubr.msk.f32.mxu1 %vm441_vm0, %v2853_v6  ;;  %2024 = vmatpush1.bf16.msra.mxu0 %v2023_v7  ;;  %v2989_v7 = vld [vmem:[%s2624_s27 + $0x80] sm:$0xff]  ;;  %v3156_v31 = vld [vmem:[%s2624_s27 + $0xe8] sm:$0xff]  ;;  %v1183_v54 = vld [vmem:[%s3962_s3 + $0x390] sm:$0xff] }
  0x4b   : > { %2026 = vmatprep.subr.bf16.mxu0 %v2025_v9  ;;  %v1160_v9 = vld [vmem:[%s3962_s3 + $0x2d8] sm:$0xff]  ;;  %2136 = vmatpush1.bf16.msra.mxu1 %v2135_v0  ;;  %v3097_v0 = vld [vmem:[%s2624_s27 + $0xb0] sm:$0xff] }
  0x4c   : > { %585 = vmatmul.mubr.f32.gmra.mrb[10].mxu0 %v2881_v18  ;;  %2138 = vmatprep.subr.bf16.mxu1 %v2137_v2  ;;  %v2141_v19 = vpack.c.bf16 %v1160_v9, %v1158_v8  ;;  %v1172_v2 = vld [vmem:[%s3962_s3 + $0x338] sm:$0xff]  ;;  %v2151_v9 = vpack.c.bf16 %v1167_v63, %v1165_v62  ;;  %v3193_v56 = vld [vmem:[%s2624_s27 + $0xf0] sm:$0xff]  ;;  %v1074_v62 = vld [vmem:[%s3962_s3 + $0x28] sm:$0xff] }
  0x4d   : > { %746 = vmatmul.mubr.f32.gmra.mrb[10].mxu1 %v2881_v18  ;;  %1863 = vmatprep.mubr.msk.f32.mxu0 %vm441_vm0, %v2892_v21  ;;  %v1076_v63 = vld [vmem:[%s3962_s3 + $0x38] sm:$0xff] }
  0x4e   : > { %1879 = vmatprep.mubr.msk.f32.mxu1 %vm441_vm0, %v2892_v21  ;;  %2028 = vmatpush1.bf16.msra.mxu0 %v2027_v22  ;;  %v1159_v22 = vld [vmem:[%s3962_s3 + $0x2d0] sm:$0xff] }
  0x4f   : > { %2030 = vmatprep.subr.bf16.mxu0 %v2029_v23  ;;  %v3025_v23 = vld [vmem:[%s2624_s27 + $0x90] sm:$0xff]  ;;  %2140 = vmatpush1.bf16.msra.mxu1 %v2139_v16  ;;  %v2143_v37 = vpack.c.bf16 %v1159_v22, %v1157_v20  ;;  %v1176_v16 = vld [vmem:[%s3962_s3 + $0x358] sm:$0xff]  ;;  %v1173_v22 = vld [vmem:[%s3962_s3 + $0x340] sm:$0xff] }
  0x50   : > { %591 = vmatmul.mubr.f32.gmra.mrb[12].mxu0 %v2917_v36  ;;  %2142 = vmatprep.subr.bf16.mxu1 %v2141_v19  ;;  %v2157_v20 = vpack.c.bf16 %v1176_v16, %v1174_v15  ;;  %v1073_v15 = vld [vmem:[%s3962_s3 + $0x20] sm:$0xff]  ;;  %v1075_v16 = vld [vmem:[%s3962_s3 + $0x30] sm:$0xff] }
  0x51   : > { %752 = vmatmul.mubr.f32.gmra.mrb[12].mxu1 %v2917_v36  ;;  %1864 = vmatprep.mubr.msk.f32.mxu0 %vm441_vm0, %v2928_v39 }
  0x52   : > { %1880 = vmatprep.mubr.msk.f32.mxu1 %vm441_vm0, %v2928_v39  ;;  %2032 = vmatpush1.bf16.msra.mxu0 %v2031_v42  ;;  %v2145_v42 = vpack.c.bf16 %v1164_v27, %v1162_v25  ;;  %v1175_v25 = vld [vmem:[%s3962_s3 + $0x350] sm:$0xff] }
  0x53   : > { %2034 = vmatprep.subr.bf16.mxu0 %v2033_v43  ;;  %v1161_v43 = vld [vmem:[%s3962_s3 + $0x2e0] sm:$0xff]  ;;  %2144 = vmatpush1.bf16.msra.mxu1 %v2143_v37  ;;  %v3145_v27 = vld [vmem:[%s2624_s27 + $0xd0] sm:$0xff]  ;;  %v2159_v34 = vpack.c.bf16 %v1175_v25, %v1173_v22  ;;  %v2059_v25 = vpack.c.bf16 %v1075_v16, %v1073_v15 }
  0x54   : > { %597 = vmatmul.mubr.f32.gmra.mrb[14].mxu0 %v2953_v55  ;;  %2146 = vmatprep.subr.bf16.mxu1 %v2145_v42  ;;  %v1177_v37 = vld [vmem:[%s3962_s3 + $0x360] sm:$0xff] }
  0x55   : > { %758 = vmatmul.mubr.f32.gmra.mrb[14].mxu1 %v2953_v55  ;;  %1865 = vmatprep.mubr.msk.f32.mxu0 %vm441_vm0, %v2964_v58  ;;  %v3169_v42 = vld [vmem:[%s2624_s27 + $0xe0] sm:$0xff]  ;;  %v2163_v48 = vpack.c.bf16 %v1179_v38, %v1177_v37 }
  0x56   : > { %1881 = vmatprep.mubr.msk.f32.mxu1 %vm441_vm0, %v2964_v58  ;;  %2036 = vmatpush1.bf16.msra.mxu0 %v2035_v59  ;;  %v2147_v59 = vpack.c.bf16 %v1163_v44, %v1161_v43  ;;  %v1182_v43 = vld [vmem:[%s3962_s3 + $0x388] sm:$0xff]  ;;  %v1184_v44 = vld [vmem:[%s3962_s3 + $0x398] sm:$0xff]  ;;  %v1081_v38 = vld [vmem:[%s3962_s3 + $0x60] sm:$0xff] }
  0x57   : > { %2038 = vmatprep.subr.bf16.mxu0 %v2037_v60  ;;  %v1072_v60 = vld [vmem:[%s3962_s3 + $0x18] sm:$0xff] }
  0x58   : > { %603 = vmatmul.mubr.f32.gmra.mrb[16].mxu0 %v2989_v7  ;;  %v2053_v8 = vpack.c.bf16 %v1072_v60, %v1070_v57  ;;  %2148 = vmatpush1.bf16.msra.mxu1 %v2147_v59  ;;  %v1186_v57 = vld [vmem:[%s3962_s3 + $0x3a8] sm:$0xff]  ;;  %v1188_v59 = vld [vmem:[%s3962_s3 + $0x3b8] sm:$0xff]  ;;  %v1069_v60 = vld [vmem:[%s3962_s3] sm:$0xff] }
  0x59   : > { %764 = vmatmul.mubr.f32.gmra.mrb[16].mxu1 %v2989_v7  ;;  %1866 = vmatprep.mubr.msk.f32.mxu0 %vm441_vm0, %v3000_v10 }
  0x5a   : > { %1882 = vmatprep.mubr.msk.f32.mxu1 %vm441_vm0, %v3000_v10  ;;  %2040 = vmatpush1.bf16.msra.mxu0 %v2039_v11  ;;  %v2153_v11 = vpack.c.bf16 %v1172_v2, %v1170_v1  ;;  %v2169_v2 = vpack.c.bf16 %v1188_v59, %v1186_v57  ;;  %v1089_v59 = vld [vmem:[%s3962_s3 + $0xa0] sm:$0xff] }
  0x5b   : > { %2042 = vmatprep.subr.bf16.mxu0 %v2041_v12  ;;  %2150 = vmatprep.subr.bf16.mxu1 %v2149_v61  ;;  %v1169_v12 = vld [vmem:[%s3962_s3 + $0x320] sm:$0xff]  ;;  %v1071_v61 = vld [vmem:[%s3962_s3 + $0x10] sm:$0xff] }
  0x5c   : > { %609 = vmatmul.mubr.f32.gmra.mrb[18].mxu0 %v3025_v23  ;;  %2152 = vmatpush1.bf16.msra.mxu1 %v2151_v9  ;;  %v2155_v19 = vpack.c.bf16 %v1171_v13, %v1169_v12  ;;  %v2055_v9 = vpack.c.bf16 %v1071_v61, %v1069_v60  ;;  %v1192_v12 = vld [vmem:[%s3962_s3 + $0x3d8] sm:$0xff]  ;;  %v2057_v13 = vpack.c.bf16 %v1076_v63, %v1074_v62  ;;  %v1091_v60 = vld [vmem:[%s3962_s3 + $0xb0] sm:$0xff]  ;;  %v1094_v61 = vld [vmem:[%s3962_s3 + $0xc8] sm:$0xff] }
  0x5d   : > { %770 = vmatmul.mubr.f32.gmra.mrb[18].mxu1 %v3025_v23  ;;  %1867 = vmatprep.mubr.msk.f32.mxu0 %vm441_vm0, %v3036_v28  ;;  %v1189_v62 = vld [vmem:[%s3962_s3 + $0x3c0] sm:$0xff] }
  0x5e   : > { %1883 = vmatprep.mubr.msk.f32.mxu1 %vm441_vm0, %v3036_v28  ;;  %2044 = vmatpush1.bf16.msra.mxu0 %v2043_v29  ;;  %v1178_v29 = vld [vmem:[%s3962_s3 + $0x368] sm:$0xff] }
  0x5f   : > { %2046 = vmatprep.subr.bf16.mxu0 %v2045_v30  ;;  %2154 = vmatprep.subr.bf16.mxu1 %v2153_v11  ;;  %v1180_v30 = vld [vmem:[%s3962_s3 + $0x378] sm:$0xff]  ;;  %v1190_v11 = vld [vmem:[%s3962_s3 + $0x3c8] sm:$0xff] }
  0x60   : > { %615 = vmatmul.mubr.f32.gmra.mrb[20].mxu0 %v3061_v45  ;;  %2156 = vmatpush1.bf16.msra.mxu1 %v2155_v19  ;;  %v2161_v35 = vpack.c.bf16 %v1180_v30, %v1178_v29  ;;  %v1080_v19 = vld [vmem:[%s3962_s3 + $0x58] sm:$0xff]  ;;  %v2173_v22 = vpack.c.bf16 %v1192_v12, %v1190_v11  ;;  %v1077_v30 = vld [vmem:[%s3962_s3 + $0x40] sm:$0xff] }
  0x61   : > { %776 = vmatmul.mubr.f32.gmra.mrb[20].mxu1 %v3061_v45  ;;  %1868 = vmatprep.mubr.msk.f32.mxu0 %vm441_vm0, %v3072_v49  ;;  %v1097_v12 = vld [vmem:[%s3962_s3 + $0xe0] sm:$0xff] }
  0x62   : > { %1884 = vmatprep.mubr.msk.f32.mxu1 %vm441_vm0, %v3072_v49  ;;  %2048 = vmatpush1.bf16.msra.mxu0 %v2047_v50  ;;  %v2165_v50 = vpack.c.bf16 %v1184_v44, %v1182_v43  ;;  %v1083_v43 = vld [vmem:[%s3962_s3 + $0x70] sm:$0xff] }
  0x63   : > { %2050 = vmatprep.subr.bf16.mxu0 %v2049_v53  ;;  %2158 = vmatprep.subr.bf16.mxu1 %v2157_v20  ;;  %v1181_v53 = vld [vmem:[%s3962_s3 + $0x380] sm:$0xff]  ;;  %v2067_v44 = vpack.c.bf16 %v1083_v43, %v1081_v38 }
  0x64   : > { %621 = vmatmul.mubr.f32.gmra.mrb[22].mxu0 %v3097_v0  ;;  %2160 = vmatpush1.bf16.msra.mxu1 %v2159_v34  ;;  %v2167_v1 = vpack.c.bf16 %v1183_v54, %v1181_v53  ;;  %v1079_v34 = vld [vmem:[%s3962_s3 + $0x50] sm:$0xff]  ;;  %v1090_v54 = vld [vmem:[%s3962_s3 + $0xa8] sm:$0xff]  ;;  %v1105_v43 = vld [vmem:[%s3962_s3 + $0x120] sm:$0xff] }
  0x65   : > { %782 = vmatmul.mubr.f32.gmra.mrb[22].mxu1 %v3097_v0  ;;  %1869 = vmatprep.mubr.msk.f32.mxu0 %vm441_vm0, %v3108_v3  ;;  %v1087_v53 = vld [vmem:[%s3962_s3 + $0x90] sm:$0xff] }
  0x66   : > { %1885 = vmatprep.mubr.msk.f32.mxu1 %vm441_vm0, %v3108_v3  ;;  %2052 = vmatpush1.bf16.msra.mxu0 %v2051_v5  ;;  %v1185_v5 = vld [vmem:[%s3962_s3 + $0x3a0] sm:$0xff] }
  0x67   : > { %2054 = vmatprep.subr.bf16.mxu0 %v2053_v8  ;;  %2162 = vmatprep.subr.bf16.mxu1 %v2161_v35  ;;  %v1187_v8 = vld [vmem:[%s3962_s3 + $0x3b0] sm:$0xff]  ;;  %v2063_v35 = vpack.c.bf16 %v1079_v34, %v1077_v30 }
  0x68   : > { %627 = vmatmul.mubr.f32.gmra.mrb[24].mxu0 %v3121_v14  ;;  %2164 = vmatpush1.bf16.msra.mxu1 %v2163_v48  ;;  %v2171_v20 = vpack.c.bf16 %v1187_v8, %v1185_v5  ;;  %v1100_v5 = vld [vmem:[%s3962_s3 + $0xf8] sm:$0xff] }
  0x69   : > { %788 = vmatmul.mubr.f32.gmra.mrb[24].mxu1 %v3121_v14  ;;  %1870 = vmatprep.mubr.msk.f32.mxu0 %vm441_vm0, %v3132_v17 }
  0x6a   : > { %1886 = vmatprep.mubr.msk.f32.mxu1 %vm441_vm0, %v3132_v17  ;;  %2166 = vmatprep.subr.bf16.mxu1 %v2165_v50  ;;  %v1085_v50 = vld [vmem:[%s3962_s3 + $0x80] sm:$0xff] }
  0x6c   : > { %633 = vmatmul.mubr.f32.gmra.mrb[26].mxu0 %v3145_v27  ;;  %2168 = vmatpush1.bf16.msra.mxu1 %v2167_v1  ;;  %v1093_v1 = vld [vmem:[%s3962_s3 + $0xc0] sm:$0xff] }
  0x6d   : > { %794 = vmatmul.mubr.f32.gmra.mrb[26].mxu1 %v3145_v27  ;;  %1871 = vmatprep.mubr.msk.f32.mxu0 %vm441_vm0, %v3156_v31 }
  0x6e   : > { %1887 = vmatprep.mubr.msk.f32.mxu1 %vm441_vm0, %v3156_v31  ;;  %2170 = vmatprep.subr.bf16.mxu1 %v2169_v2  ;;  %v1095_v2 = vld [vmem:[%s3962_s3 + $0xd0] sm:$0xff] }
  0x6f   : > { %v2079_v11 = vpack.c.bf16 %v1095_v2, %v1093_v1  ;;  %v1126_v1 = vld [vmem:[%s3962_s3 + $0x1c8] sm:$0xff] }
  0x70   : > { %639 = vmatmul.mubr.f32.gmra.mrb[28].mxu0 %v3169_v42  ;;  %2172 = vmatpush1.bf16.msra.mxu1 %v2171_v20  ;;  %v1104_v20 = vld [vmem:[%s3962_s3 + $0x118] sm:$0xff] }
  0x71   : > { %800 = vmatmul.mubr.f32.gmra.mrb[28].mxu1 %v3169_v42  ;;  %1872 = vmatprep.mubr.msk.f32.mxu0 %vm441_vm0, %v3180_v46 }
  0x72   : > { %1888 = vmatprep.mubr.msk.f32.mxu1 %vm441_vm0, %v3180_v46  ;;  %2174 = vmatprep.subr.bf16.mxu1 %v2173_v22 }
  0x74   : > { %645 = vmatmul.mubr.f32.gmra.mrb[30].mxu0 %v3193_v56 }
  0x75   : > { %806 = vmatmul.mubr.f32.gmra.mrb[30].mxu1 %v3193_v56  ;;  %1889 = vmatprep.mubr.msk.f32.mxu0 %vm441_vm0, %v2642_v47  ;;  %v1078_v47 = vld [vmem:[%s3962_s3 + $0x48] sm:$0xff] }
  0x76   : > { %v2061_v29 = vpack.c.bf16 %v1080_v19, %v1078_v47  ;;  %v1195_v47 = vld [vmem:[%s3962_s3 + $0x3f0] sm:$0xff]  ;;  %v1102_v19 = vld [vmem:[%s3962_s3 + $0x108] sm:$0xff] }
  0x78   : > { %877 = vmatmul.mubr.f32.vlgmr.msra.gmra.mrb[32].mxu0 %v2727_v24  ;;  %v1082_v24 = vld [vmem:[%s3962_s3 + $0x68] sm:$0xff] }
  0x79   : > { %1890 = vmatprep.mubr.msk.f32.mxu0 %vm441_vm0, %v2730_v26  ;;  %2056 = vmatpush1.bf16.msra.mxu0 %v2055_v9  ;;  %v1084_v26 = vld [vmem:[%s3962_s3 + $0x78] sm:$0xff]  ;;  %v1194_v9 = vld [vmem:[%s3962_s3 + $0x3e8] sm:$0xff] }
  0x7a   : > { %2058 = vmatprep.subr.bf16.mxu0 %v2057_v13  ;;  %v2065_v37 = vpack.c.bf16 %v1084_v26, %v1082_v24  ;;  %v1196_v13 = vld [vmem:[%s3962_s3 + $0x3f8] sm:$0xff]  ;;  %v2085_v24 = vpack.c.bf16 %v1104_v20, %v1102_v19  ;;  %v1103_v26 = vld [vmem:[%s3962_s3 + $0x110] sm:$0xff] }
  0x7b   : > { %v2177_v16 = vpack.c.bf16 %v1196_v13, %v1194_v9  ;;  %v1129_v9 = vld [vmem:[%s3962_s3 + $0x1e0] sm:$0xff] }
  0x7c   : > { %883 = vmatmul.mubr.f32.gmra.mrb[34].mxu0 %v2747_v32  ;;  %v1086_v32 = vld [vmem:[%s3962_s3 + $0x88] sm:$0xff] }
  0x7d   : > { %1891 = vmatprep.mubr.msk.f32.mxu0 %vm441_vm0, %v2754_v33  ;;  %2060 = vmatpush1.bf16.msra.mxu0 %v2059_v25  ;;  %v1088_v33 = vld [vmem:[%s3962_s3 + $0x98] sm:$0xff]  ;;  %v1198_v25 = vld [vmem:[%s3962_s3 + $0x408] sm:$0xff] }
  0x7e   : > { %2062 = vmatprep.subr.bf16.mxu0 %v2061_v29  ;;  %v2069_v48 = vpack.c.bf16 %v1088_v33, %v1086_v32  ;;  %v1200_v29 = vld [vmem:[%s3962_s3 + $0x418] sm:$0xff]  ;;  %v1107_v32 = vld [vmem:[%s3962_s3 + $0x130] sm:$0xff]  ;;  %v1110_v33 = vld [vmem:[%s3962_s3 + $0x148] sm:$0xff] }
  0x7f   : > { %v2181_v34 = vpack.c.bf16 %v1200_v29, %v1198_v25 }
  0x80   : > { %889 = vmatmul.mubr.f32.gmra.mrb[36].mxu0 %v2773_v40  ;;  %v1092_v40 = vld [vmem:[%s3962_s3 + $0xb8] sm:$0xff] }
  0x81   : > { %1892 = vmatprep.mubr.msk.f32.mxu0 %vm441_vm0, %v2778_v41  ;;  %2064 = vmatpush1.bf16.msra.mxu0 %v2063_v35  ;;  %v2071_v41 = vpack.c.bf16 %v1087_v53, %v1085_v50  ;;  %v2073_v57 = vpack.c.bf16 %v1092_v40, %v1090_v54  ;;  %v1106_v35 = vld [vmem:[%s3962_s3 + $0x128] sm:$0xff]  ;;  %v1111_v50 = vld [vmem:[%s3962_s3 + $0x150] sm:$0xff]  ;;  %v1113_v40 = vld [vmem:[%s3962_s3 + $0x160] sm:$0xff] }
  0x82   : > { %2066 = vmatprep.subr.bf16.mxu0 %v2065_v37  ;;  %v1114_v53 = vld [vmem:[%s3962_s3 + $0x168] sm:$0xff] }
  0x84   : > { %895 = vmatmul.mubr.f32.gmra.mrb[38].mxu0 %v2803_v51  ;;  %v1096_v51 = vld [vmem:[%s3962_s3 + $0xd8] sm:$0xff] }
  0x85   : > { %1893 = vmatprep.mubr.msk.f32.mxu0 %vm441_vm0, %v2806_v52  ;;  %2068 = vmatpush1.bf16.msra.mxu0 %v2067_v44  ;;  %v2075_v52 = vpack.c.bf16 %v1091_v60, %v1089_v59  ;;  %v2077_v63 = vpack.c.bf16 %v1096_v51, %v1094_v61  ;;  %v1117_v60 = vld [vmem:[%s3962_s3 + $0x180] sm:$0xff]  ;;  %v1119_v61 = vld [vmem:[%s3962_s3 + $0x190] sm:$0xff]  ;;  %v1122_v51 = vld [vmem:[%s3962_s3 + $0x1a8] sm:$0xff] }
  0x86   : > { %2070 = vmatprep.subr.bf16.mxu0 %v2069_v48  ;;  %v1109_v48 = vld [vmem:[%s3962_s3 + $0x140] sm:$0xff] }
  0x88   : > { %901 = vmatmul.mubr.f32.gmra.mrb[40].mxu0 %v2845_v4  ;;  %v1191_v4 = vld [vmem:[%s3962_s3 + $0x3d0] sm:$0xff] }
  0x89   : > { %1894 = vmatprep.mubr.msk.f32.mxu0 %vm441_vm0, %v2853_v6  ;;  %2072 = vmatpush1.bf16.msra.mxu0 %v2071_v41  ;;  %v1098_v6 = vld [vmem:[%s3962_s3 + $0xe8] sm:$0xff]  ;;  %v2175_v8 = vpack.c.bf16 %v1191_v4, %v1189_v62  ;;  %v1115_v41 = vld [vmem:[%s3962_s3 + $0x170] sm:$0xff]  ;;  %v1121_v62 = vld [vmem:[%s3962_s3 + $0x1a0] sm:$0xff] }
  0x8a   : > { %2074 = vmatprep.subr.bf16.mxu0 %v2073_v57  ;;  %v2081_v15 = vpack.c.bf16 %v1100_v5, %v1098_v6  ;;  %v1118_v57 = vld [vmem:[%s3962_s3 + $0x188] sm:$0xff]  ;;  %v1125_v4 = vld [vmem:[%s3962_s3 + $0x1c0] sm:$0xff]  ;;  %v1127_v6 = vld [vmem:[%s3962_s3 + $0x1d0] sm:$0xff] }
  0x8b   : > { %2176 = vmatpush1.bf16.msra.mxu1 %v2175_v8  ;;  %v1130_v5 = vld [vmem:[%s3962_s3 + $0x1e8] sm:$0xff] }
  0x8c   : > { %907 = vmatmul.mubr.f32.gmra.mrb[42].mxu0 %v2881_v18  ;;  %v1099_v18 = vld [vmem:[%s3962_s3 + $0xf0] sm:$0xff]  ;;  %2178 = vmatprep.subr.bf16.mxu1 %v2177_v16 }
  0x8d   : > { %1895 = vmatprep.mubr.msk.f32.mxu0 %vm441_vm0, %v2892_v21  ;;  %2076 = vmatpush1.bf16.msra.mxu0 %v2075_v52  ;;  %v1193_v21 = vld [vmem:[%s3962_s3 + $0x3e0] sm:$0xff]  ;;  %v2083_v30 = vpack.c.bf16 %v1099_v18, %v1097_v12 }
  0x8e   : > { %2078 = vmatprep.subr.bf16.mxu0 %v2077_v63  ;;  %v2179_v22 = vpack.c.bf16 %v1195_v47, %v1193_v21  ;;  %v1123_v63 = vld [vmem:[%s3962_s3 + $0x1b0] sm:$0xff] }
  0x90   : > { %913 = vmatmul.mubr.f32.gmra.mrb[44].mxu0 %v2917_v36  ;;  %v1101_v36 = vld [vmem:[%s3962_s3 + $0x100] sm:$0xff]  ;;  %2180 = vmatpush1.bf16.msra.mxu1 %v2179_v22 }
  0x91   : > { %1896 = vmatprep.mubr.msk.f32.mxu0 %vm441_vm0, %v2928_v39  ;;  %2080 = vmatpush1.bf16.msra.mxu0 %v2079_v11  ;;  %v1108_v39 = vld [vmem:[%s3962_s3 + $0x138] sm:$0xff]  ;;  %v2087_v37 = vpack.c.bf16 %v1103_v26, %v1101_v36  ;;  %v1131_v11 = vld [vmem:[%s3962_s3 + $0x1f0] sm:$0xff] }
  0x92   : > { %2082 = vmatprep.subr.bf16.mxu0 %v2081_v15  ;;  %2182 = vmatprep.subr.bf16.mxu1 %v2181_v34  ;;  %v2089_v38 = vpack.c.bf16 %v1108_v39, %v1106_v35  ;;  %v3481_v15 = vld [vmem:[%s3961_s2] sm:$0x3f]  ;;  %v1199_v36 = vld [vmem:[%s3962_s3 + $0x410] sm:$0xff]  ;;  %v1202_v35 = vld [vmem:[%s3962_s3 + $0x428] sm:$0xff] }
  0x93   : > { %v1204_v39 = vld [vmem:[%s3962_s3 + $0x438] sm:$0xff] }
  0x94   : > { %919 = vmatmul.mubr.f32.gmra.mrb[46].mxu0 %v2953_v55  ;;  %v1112_v55 = vld [vmem:[%s3962_s3 + $0x158] sm:$0xff] }
  0x95   : > { %1897 = vmatprep.mubr.msk.f32.mxu0 %vm441_vm0, %v2964_v58  ;;  %2084 = vmatpush1.bf16.msra.mxu0 %v2083_v30  ;;  %v2091_v58 = vpack.c.bf16 %v1107_v32, %v1105_v43  ;;  %v2093_v44 = vpack.c.bf16 %v1112_v55, %v1110_v33 }
  0x96   : > { %2086 = vmatprep.subr.bf16.mxu0 %v2085_v24  ;;  %v1197_v24 = vld [vmem:[%s3962_s3 + $0x400] sm:$0xff] }
  0x98   : > { %925 = vmatmul.mubr.f32.gmra.mrb[48].mxu0 %v2989_v7  ;;  %v1116_v7 = vld [vmem:[%s3962_s3 + $0x178] sm:$0xff] }
  0x99   : > { %1898 = vmatprep.mubr.msk.f32.mxu0 %vm441_vm0, %v3000_v10  ;;  %2088 = vmatpush1.bf16.msra.mxu0 %v2087_v37  ;;  %v2095_v10 = vpack.c.bf16 %v1111_v50, %v1109_v48  ;;  %v2097_v54 = vpack.c.bf16 %v1116_v7, %v1114_v53 }
  0x9a   : > { %2090 = vmatprep.subr.bf16.mxu0 %v2089_v38 }
  0x9c   : > { %931 = vmatmul.mubr.f32.gmra.mrb[50].mxu0 %v3025_v23  ;;  %v1120_v23 = vld [vmem:[%s3962_s3 + $0x198] sm:$0xff] }
  0x9d   : > { %1899 = vmatprep.mubr.msk.f32.mxu0 %vm441_vm0, %v3036_v28  ;;  %2092 = vmatpush1.bf16.msra.mxu0 %v2091_v58  ;;  %v2099_v28 = vpack.c.bf16 %v1115_v41, %v1113_v40  ;;  %v2101_v59 = vpack.c.bf16 %v1120_v23, %v1118_v57  ;;  %v1203_v40 = vld [vmem:[%s3962_s3 + $0x430] sm:$0xff]  ;;  %v1206_v57 = vld [vmem:[%s3962_s3 + $0x448] sm:$0xff]  ;;  %v1208_v23 = vld [vmem:[%s3962_s3 + $0x458] sm:$0xff] }
  0x9e   : > { %2094 = vmatprep.subr.bf16.mxu0 %v2093_v44  ;;  %v2183_v44 = vpack.c.bf16 %v1199_v36, %v1197_v24  ;;  %v1214_v36 = vld [vmem:[%s3962_s3 + $0x488] sm:$0xff] }
  0xa0   : > { %937 = vmatmul.mubr.f32.gmra.mrb[52].mxu0 %v3061_v45  ;;  %v1124_v45 = vld [vmem:[%s3962_s3 + $0x1b8] sm:$0xff] }
  0xa1   : > { %1900 = vmatprep.mubr.msk.f32.mxu0 %vm441_vm0, %v3072_v49  ;;  %2096 = vmatpush1.bf16.msra.mxu0 %v2095_v10  ;;  %v2103_v49 = vpack.c.bf16 %v1119_v61, %v1117_v60  ;;  %v2105_v52 = vpack.c.bf16 %v1124_v45, %v1122_v51  ;;  %v2185_v10 = vpack.c.bf16 %v1204_v39, %v1202_v35 }
  0xa2   : > { %2098 = vmatprep.subr.bf16.mxu0 %v2097_v54  ;;  %v1201_v54 = vld [vmem:[%s3962_s3 + $0x420] sm:$0xff] }
  0xa4   : > { %943 = vmatmul.mubr.f32.gmra.mrb[54].mxu0 %v3097_v0  ;;  %v1128_v0 = vld [vmem:[%s3962_s3 + $0x1d8] sm:$0xff] }
  0xa5   : > { %1901 = vmatprep.mubr.msk.f32.mxu0 %vm441_vm0, %v3108_v3  ;;  %2100 = vmatpush1.bf16.msra.mxu0 %v2099_v28  ;;  %v2107_v3 = vpack.c.bf16 %v1123_v63, %v1121_v62  ;;  %v2109_v2 = vpack.c.bf16 %v1128_v0, %v1126_v1 }
  0xa6   : > { %2102 = vmatprep.subr.bf16.mxu0 %v2101_v59 }
  0xa8   : > { %949 = vmatmul.mubr.f32.gmra.mrb[56].mxu0 %v3121_v14  ;;  %v1132_v14 = vld [vmem:[%s3962_s3 + $0x1f8] sm:$0xff] }
  0xa9   : > { %1902 = vmatprep.mubr.msk.f32.mxu0 %vm441_vm0, %v3132_v17  ;;  %2104 = vmatpush1.bf16.msra.mxu0 %v2103_v49  ;;  %v2111_v17 = vpack.c.bf16 %v1127_v6, %v1125_v4  ;;  %v2113_v8 = vpack.c.bf16 %v1132_v14, %v1130_v5  ;;  %v1207_v4 = vld [vmem:[%s3962_s3 + $0x450] sm:$0xff]  ;;  %v1210_v5 = vld [vmem:[%s3962_s3 + $0x468] sm:$0xff]  ;;  %v1212_v14 = vld [vmem:[%s3962_s3 + $0x478] sm:$0xff] }
  0xaa   : > { %2106 = vmatprep.subr.bf16.mxu0 %v2105_v52  ;;  %v2187_v52 = vpack.c.bf16 %v1203_v40, %v1201_v54  ;;  %v1218_v40 = vld [vmem:[%s3962_s3 + $0x4a8] sm:$0xff] }
  0xac   : > { %955 = vmatmul.mubr.f32.gmra.mrb[58].mxu0 %v3145_v27  ;;  %v2115_v27 = vpack.c.bf16 %v1131_v11, %v1129_v9 }
  0xad   : > { %1903 = vmatprep.mubr.msk.f32.mxu0 %vm441_vm0, %v3156_v31  ;;  %2108 = vmatpush1.bf16.msra.mxu0 %v2107_v3  ;;  %v411_v31 = vlaneseq  ;;  %v2189_v3 = vpack.c.bf16 %v1208_v23, %v1206_v57 }
  0xae   : > { %2110 = vmatprep.subr.bf16.mxu0 %v2109_v2  ;;  %v1205_v2 = vld [vmem:[%s3962_s3 + $0x440] sm:$0xff] }
  0xaf   : > { %v3475_v12 = vshrl.u32 %v411_v31, 7 }
  0xb0   : > { %961 = vmatmul.mubr.f32.gmra.mrb[60].mxu0 %v3169_v42 }
  0xb1   : > { %1904 = vmatprep.mubr.msk.f32.mxu0 %vm441_vm0, %v3180_v46  ;;  %2112 = vmatpush1.bf16.msra.mxu0 %v2111_v17  ;;  %v413_v13 = vsub.s32 0, %v3475_v12  ;;  %v421_v42 = vsub.s32 2, %v3475_v12  ;;  %v417_v46 = vsub.s32 1, %v3475_v12  ;;  %v425_v18 = vsub.s32 3, %v3475_v12 }
  0xb2   : > { %2114 = vmatprep.subr.bf16.mxu0 %v2113_v8 }
  0xb3   : > { %v3492_v16 = vrot.slane %v3481_v15, %v421_v42  ;;  %v3497_v21 = vrot.slane %v3481_v15, %v417_v46  ;;  %v3500_v47 = vrot.slane %v3481_v15, %v425_v18  ;;  %v2191_v18 = vpack.c.bf16 %v1207_v4, %v1205_v2  ;;  %v1222_v4 = vld [vmem:[%s3962_s3 + $0x4c8] sm:$0xff] }
  0xb4   : > { %967 = vmatmul.mubr.f32.gmra.mrb[62].mxu0 %v3193_v56  ;;  %v3489_v56 = vrot.slane %v3481_v15, %v413_v13 }
  0xb5   : > { %2116 = vmatpush1.bf16.msra.mxu0 %v2115_v27 }
 0x10b   : > { %v556_v19 = vpop.f32.mrb[0].mxu0 }
 0x10c   : > { %v557_v20 = vadd.f32 %v556_v19, %v3489_v56  ;;  %v717_v22 = vpop.f32.mrb[0].mxu1  ;;  %v558_v25 = vpop.f32.mrb[1].mxu0 }
 0x10d   : > { %v718_v29 = vadd.f32 %v717_v22, %v3492_v16  ;;  %v559_v30 = vadd.f32 %v558_v25, %v3497_v21  ;;  %v719_v34 = vpop.f32.mrb[1].mxu1 }
 0x10e   : > { %v720_v26 = vadd.f32 %v719_v34, %v3500_v47  ;;  %v973_v43 = vmax.f32 %v557_v20, 0.0  ;;  %v1211_v34 = vld [vmem:[%s3962_s3 + $0x470] sm:$0xff] }
 0x10f   : > { %v974_v37 = vmax.f32 %v559_v30, 0.0  ;;  %v562_v38 = vpop.f32.mrb[2].mxu0  ;;  %v975_v48 = vmax.f32 %v718_v29, 0.0  ;;  %v2193_v29 = vpack.c.bf16 %v1212_v14, %v1210_v5  ;;  %v1209_v30 = vld [vmem:[%s3962_s3 + $0x460] sm:$0xff] }
 0x110   : > { %v976_v32 = vmax.f32 %v720_v26, 0.0  ;;  %v563_v33 = vadd.f32 %v562_v38, %v3489_v56  ;;  %v723_v55 = vpop.f32.mrb[2].mxu1  ;;  %v564_v58 = vpop.f32.mrb[3].mxu0  ;;  %v1216_v26 = vld [vmem:[%s3962_s3 + $0x498] sm:$0xff] }
 0x111   : > { %v724_v50 = vadd.f32 %v723_v55, %v3492_v16  ;;  %v565_v53 = vadd.f32 %v564_v58, %v3497_v21  ;;  %v725_v7 = vpop.f32.mrb[3].mxu1  ;;  %1337 = vmatprep.mubr.f32.mxu0 %v974_v37  ;;  %v2195_v55 = vpack.c.bf16 %v1211_v34, %v1209_v30  ;;  %v1226_v34 = vld [vmem:[%s3962_s3 + $0x4e8] sm:$0xff] }
 0x112   : > { %v726_v41 = vadd.f32 %v725_v7, %v3500_v47  ;;  %1498 = vmatprep.mubr.f32.mxu1 %v976_v32  ;;  %1338 = vmatmul.mubr.f32.vlgmr.msra.gmra.mrb[64].mxu0 %v973_v43  ;;  %v979_v60 = vmax.f32 %v563_v33, 0.0  ;;  %v1213_v7 = vld [vmem:[%s3962_s3 + $0x480] sm:$0xff] }
 0x113   : > { %v980_v28 = vmax.f32 %v565_v53, 0.0  ;;  %1499 = vmatmul.mubr.f32.vlgmr.msra.gmra.mrb[32].mxu1 %v975_v48  ;;  %v568_v59 = vpop.f32.mrb[4].mxu0  ;;  %v981_v62 = vmax.f32 %v724_v50, 0.0  ;;  %v2197_v53 = vpack.c.bf16 %v1216_v26, %v1214_v36 }
 0x114   : > { %v982_v61 = vmax.f32 %v726_v41, 0.0  ;;  %v569_v51 = vadd.f32 %v568_v59, %v3489_v56  ;;  %v729_v45 = vpop.f32.mrb[4].mxu1  ;;  %2184 = vmatpush1.bf16.msra.mxu1 %v2183_v44  ;;  %v570_v49 = vpop.f32.mrb[5].mxu0  ;;  %v1220_v41 = vld [vmem:[%s3962_s3 + $0x4b8] sm:$0xff] }
 0x115   : > { %v730_v63 = vadd.f32 %v729_v45, %v3492_v16  ;;  %v571_v1 = vadd.f32 %v570_v49, %v3497_v21  ;;  %v731_v0 = vpop.f32.mrb[5].mxu1  ;;  %1343 = vmatprep.mubr.f32.mxu0 %v980_v28  ;;  %2186 = vmatprep.subr.bf16.mxu1 %v2185_v10  ;;  %v1215_v10 = vld [vmem:[%s3962_s3 + $0x490] sm:$0xff] }
 0x116   : > { %v732_v6 = vadd.f32 %v731_v0, %v3500_v47  ;;  %1504 = vmatprep.mubr.f32.mxu1 %v982_v61  ;;  %1344 = vmatmul.mubr.f32.gmra.mrb[66].mxu0 %v979_v60  ;;  %v985_v9 = vmax.f32 %v569_v51, 0.0  ;;  %v2199_v45 = vpack.c.bf16 %v1215_v10, %v1213_v7  ;;  %v1217_v0 = vld [vmem:[%s3962_s3 + $0x4a0] sm:$0xff]  ;;  %v1230_v10 = vld [vmem:[%s3962_s3 + $0x508] sm:$0xff] }
 0x117   : > { %v986_v17 = vmax.f32 %v571_v1, 0.0  ;;  %1505 = vmatmul.mubr.f32.gmra.mrb[34].mxu1 %v981_v62  ;;  %v574_v8 = vpop.f32.mrb[6].mxu0  ;;  %v987_v19 = vmax.f32 %v730_v63, 0.0  ;;  %v2201_v1 = vpack.c.bf16 %v1220_v41, %v1218_v40 }
 0x118   : > { %v988_v11 = vmax.f32 %v732_v6, 0.0  ;;  %v575_v27 = vadd.f32 %v574_v8, %v3489_v56  ;;  %v735_v31 = vpop.f32.mrb[6].mxu1  ;;  %2188 = vmatpush1.bf16.msra.mxu1 %v2187_v52  ;;  %v576_v42 = vpop.f32.mrb[7].mxu0  ;;  %v1224_v6 = vld [vmem:[%s3962_s3 + $0x4d8] sm:$0xff] }
 0x119   : > { %v736_v20 = vadd.f32 %v735_v31, %v3492_v16  ;;  %v577_v22 = vadd.f32 %v576_v42, %v3497_v21  ;;  %v737_v25 = vpop.f32.mrb[7].mxu1  ;;  %1349 = vmatprep.mubr.f32.mxu0 %v986_v17  ;;  %2190 = vmatprep.subr.bf16.mxu1 %v2189_v3  ;;  %v1219_v3 = vld [vmem:[%s3962_s3 + $0x4b0] sm:$0xff] }
 0x11a   : > { %v738_v24 = vadd.f32 %v737_v25, %v3500_v47  ;;  %1510 = vmatprep.mubr.f32.mxu1 %v988_v11  ;;  %1350 = vmatmul.mubr.f32.gmra.mrb[68].mxu0 %v985_v9  ;;  %v991_v37 = vmax.f32 %v575_v27, 0.0  ;;  %v2203_v31 = vpack.c.bf16 %v1219_v3, %v1217_v0  ;;  %v1221_v25 = vld [vmem:[%s3962_s3 + $0x4c0] sm:$0xff]  ;;  %v1234_v3 = vld [vmem:[%s3962_s3 + $0x528] sm:$0xff] }
 0x11b   : > { %v992_v35 = vmax.f32 %v577_v22, 0.0  ;;  %1511 = vmatmul.mubr.f32.gmra.mrb[36].mxu1 %v987_v19  ;;  %v580_v39 = vpop.f32.mrb[8].mxu0  ;;  %v993_v58 = vmax.f32 %v736_v20, 0.0  ;;  %v2205_v22 = vpack.c.bf16 %v1224_v6, %v1222_v4 }
 0x11c   : > { %v994_v38 = vmax.f32 %v738_v24, 0.0  ;;  %v581_v43 = vadd.f32 %v580_v39, %v3489_v56  ;;  %v741_v32 = vpop.f32.mrb[8].mxu1  ;;  %2192 = vmatpush1.bf16.msra.mxu1 %v2191_v18  ;;  %v582_v33 = vpop.f32.mrb[9].mxu0  ;;  %v1228_v24 = vld [vmem:[%s3962_s3 + $0x4f8] sm:$0xff] }
 0x11d   : > { %v742_v44 = vadd.f32 %v741_v32, %v3492_v16  ;;  %v583_v48 = vadd.f32 %v582_v33, %v3497_v21  ;;  %v743_v50 = vpop.f32.mrb[9].mxu1  ;;  %1355 = vmatprep.mubr.f32.mxu0 %v992_v35  ;;  %2194 = vmatprep.subr.bf16.mxu1 %v2193_v29  ;;  %v1223_v29 = vld [vmem:[%s3962_s3 + $0x4d0] sm:$0xff] }
 0x11e   : > { %v744_v54 = vadd.f32 %v743_v50, %v3500_v47  ;;  %1516 = vmatprep.mubr.f32.mxu1 %v994_v38  ;;  %1356 = vmatmul.mubr.f32.gmra.mrb[70].mxu0 %v991_v37  ;;  %v997_v28 = vmax.f32 %v581_v43, 0.0  ;;  %v2207_v32 = vpack.c.bf16 %v1223_v29, %v1221_v25  ;;  %v1225_v50 = vld [vmem:[%s3962_s3 + $0x4e0] sm:$0xff]  ;;  %v1238_v29 = vld [vmem:[%s3962_s3 + $0x548] sm:$0xff] }
 0x11f   : > { %v998_v57 = vmax.f32 %v583_v48, 0.0  ;;  %1517 = vmatmul.mubr.f32.gmra.mrb[38].mxu1 %v993_v58  ;;  %v586_v23 = vpop.f32.mrb[10].mxu0  ;;  %v999_v49 = vmax.f32 %v742_v44, 0.0  ;;  %v2209_v48 = vpack.c.bf16 %v1228_v24, %v1226_v34 }
 0x120   : > { %v1000_v59 = vmax.f32 %v744_v54, 0.0  ;;  %v587_v60 = vadd.f32 %v586_v23, %v3489_v56  ;;  %v747_v61 = vpop.f32.mrb[10].mxu1  ;;  %2196 = vmatpush1.bf16.msra.mxu1 %v2195_v55  ;;  %v588_v51 = vpop.f32.mrb[11].mxu0  ;;  %v1232_v54 = vld [vmem:[%s3962_s3 + $0x518] sm:$0xff] }
 0x121   : > { %v748_v52 = vadd.f32 %v747_v61, %v3492_v16  ;;  %v589_v62 = vadd.f32 %v588_v51, %v3497_v21  ;;  %v749_v63 = vpop.f32.mrb[11].mxu1  ;;  %1361 = vmatprep.mubr.f32.mxu0 %v998_v57  ;;  %2198 = vmatprep.subr.bf16.mxu1 %v2197_v53  ;;  %v1227_v53 = vld [vmem:[%s3962_s3 + $0x4f0] sm:$0xff] }
 0x122   : > { %v750_v2 = vadd.f32 %v749_v63, %v3500_v47  ;;  %1522 = vmatprep.mubr.f32.mxu1 %v1000_v59  ;;  %1362 = vmatmul.mubr.f32.gmra.mrb[72].mxu0 %v997_v28  ;;  %v1003_v17 = vmax.f32 %v587_v60, 0.0  ;;  %v2211_v61 = vpack.c.bf16 %v1227_v53, %v1225_v50  ;;  %v1229_v63 = vld [vmem:[%s3962_s3 + $0x500] sm:$0xff]  ;;  %v1242_v53 = vld [vmem:[%s3962_s3 + $0x568] sm:$0xff] }
 0x123   : > { %v1004_v5 = vmax.f32 %v589_v62, 0.0  ;;  %1523 = vmatmul.mubr.f32.gmra.mrb[40].mxu1 %v999_v49  ;;  %v592_v14 = vpop.f32.mrb[12].mxu0  ;;  %v1005_v42 = vmax.f32 %v748_v52, 0.0  ;;  %v2213_v62 = vpack.c.bf16 %v1232_v54, %v1230_v10 }
 0x124   : > { %v1006_v8 = vmax.f32 %v750_v2, 0.0  ;;  %v593_v9 = vadd.f32 %v592_v14, %v3489_v56  ;;  %v753_v11 = vpop.f32.mrb[12].mxu1  ;;  %2200 = vmatpush1.bf16.msra.mxu1 %v2199_v45  ;;  %v594_v27 = vpop.f32.mrb[13].mxu0  ;;  %v1236_v2 = vld [vmem:[%s3962_s3 + $0x538] sm:$0xff] }
 0x125   : > { %v754_v18 = vadd.f32 %v753_v11, %v3492_v16  ;;  %v595_v19 = vadd.f32 %v594_v27, %v3497_v21  ;;  %v755_v20 = vpop.f32.mrb[13].mxu1  ;;  %1367 = vmatprep.mubr.f32.mxu0 %v1004_v5  ;;  %2202 = vmatprep.subr.bf16.mxu1 %v2201_v1  ;;  %v1231_v1 = vld [vmem:[%s3962_s3 + $0x510] sm:$0xff] }
 0x126   : > { %v756_v30 = vadd.f32 %v755_v20, %v3500_v47  ;;  %1528 = vmatprep.mubr.f32.mxu1 %v1006_v8  ;;  %1368 = vmatmul.mubr.f32.gmra.mrb[74].mxu0 %v1003_v17  ;;  %v1009_v35 = vmax.f32 %v593_v9, 0.0  ;;  %v2215_v11 = vpack.c.bf16 %v1231_v1, %v1229_v63  ;;  %v1233_v20 = vld [vmem:[%s3962_s3 + $0x520] sm:$0xff]  ;;  %v1246_v1 = vld [vmem:[%s3962_s3 + $0x588] sm:$0xff] }
 0x127   : > { %v1010_v36 = vmax.f32 %v595_v19, 0.0  ;;  %1529 = vmatmul.mubr.f32.gmra.mrb[42].mxu1 %v1005_v42  ;;  %v598_v26 = vpop.f32.mrb[14].mxu0  ;;  %v1011_v33 = vmax.f32 %v754_v18, 0.0  ;;  %v2217_v19 = vpack.c.bf16 %v1236_v2, %v1234_v3 }
 0x128   : > { %v1012_v39 = vmax.f32 %v756_v30, 0.0  ;;  %v599_v37 = vadd.f32 %v598_v26, %v3489_v56  ;;  %v759_v38 = vpop.f32.mrb[14].mxu1  ;;  %2204 = vmatpush1.bf16.msra.mxu1 %v2203_v31  ;;  %v600_v43 = vpop.f32.mrb[15].mxu0  ;;  %v1240_v30 = vld [vmem:[%s3962_s3 + $0x558] sm:$0xff] }
 0x129   : > { %v760_v55 = vadd.f32 %v759_v38, %v3492_v16  ;;  %v601_v58 = vadd.f32 %v600_v43, %v3497_v21  ;;  %v761_v44 = vpop.f32.mrb[15].mxu1  ;;  %1373 = vmatprep.mubr.f32.mxu0 %v1010_v36  ;;  %2206 = vmatprep.subr.bf16.mxu1 %v2205_v22  ;;  %v1235_v22 = vld [vmem:[%s3962_s3 + $0x530] sm:$0xff] }
 0x12a   : > { %v762_v7 = vadd.f32 %v761_v44, %v3500_v47  ;;  %1534 = vmatprep.mubr.f32.mxu1 %v1012_v39  ;;  %1374 = vmatmul.mubr.f32.gmra.mrb[76].mxu0 %v1009_v35  ;;  %v1015_v57 = vmax.f32 %v599_v37, 0.0  ;;  %v2219_v38 = vpack.c.bf16 %v1235_v22, %v1233_v20  ;;  %v1237_v44 = vld [vmem:[%s3962_s3 + $0x540] sm:$0xff]  ;;  %v1250_v22 = vld [vmem:[%s3962_s3 + $0x5a8] sm:$0xff] }
 0x12b   : > { %v1016_v40 = vmax.f32 %v601_v58, 0.0  ;;  %1535 = vmatmul.mubr.f32.gmra.mrb[44].mxu1 %v1011_v33  ;;  %v604_v41 = vpop.f32.mrb[16].mxu0  ;;  %v1017_v51 = vmax.f32 %v760_v55, 0.0  ;;  %v2221_v58 = vpack.c.bf16 %v1240_v30, %v1238_v29 }
 0x12c   : > { %v1018_v23 = vmax.f32 %v762_v7, 0.0  ;;  %v605_v28 = vadd.f32 %v604_v41, %v3489_v56  ;;  %v765_v59 = vpop.f32.mrb[16].mxu1  ;;  %2208 = vmatpush1.bf16.msra.mxu1 %v2207_v32  ;;  %v606_v60 = vpop.f32.mrb[17].mxu0  ;;  %v1244_v7 = vld [vmem:[%s3962_s3 + $0x578] sm:$0xff] }
 0x12d   : > { %v766_v45 = vadd.f32 %v765_v59, %v3492_v16  ;;  %v607_v49 = vadd.f32 %v606_v60, %v3497_v21  ;;  %v767_v52 = vpop.f32.mrb[17].mxu1  ;;  %1379 = vmatprep.mubr.f32.mxu0 %v1016_v40  ;;  %2210 = vmatprep.subr.bf16.mxu1 %v2209_v48  ;;  %v1239_v48 = vld [vmem:[%s3962_s3 + $0x550] sm:$0xff] }
 0x12e   : > { %v768_v0 = vadd.f32 %v767_v52, %v3500_v47  ;;  %1540 = vmatprep.mubr.f32.mxu1 %v1018_v23  ;;  %1380 = vmatmul.mubr.f32.gmra.mrb[78].mxu0 %v1015_v57  ;;  %v1021_v5 = vmax.f32 %v605_v28, 0.0  ;;  %v2223_v59 = vpack.c.bf16 %v1239_v48, %v1237_v44  ;;  %v1241_v52 = vld [vmem:[%s3962_s3 + $0x560] sm:$0xff]  ;;  %v1254_v48 = vld [vmem:[%s3962_s3 + $0x5c8] sm:$0xff] }
 0x12f   : > { %v1022_v4 = vmax.f32 %v607_v49, 0.0  ;;  %1541 = vmatmul.mubr.f32.gmra.mrb[46].mxu1 %v1017_v51  ;;  %v610_v6 = vpop.f32.mrb[18].mxu0  ;;  %v1023_v27 = vmax.f32 %v766_v45, 0.0  ;;  %v2225_v49 = vpack.c.bf16 %v1244_v7, %v1242_v53 }
 0x130   : > { %v1024_v14 = vmax.f32 %v768_v0, 0.0  ;;  %v611_v17 = vadd.f32 %v610_v6, %v3489_v56  ;;  %v771_v8 = vpop.f32.mrb[18].mxu1  ;;  %2212 = vmatpush1.bf16.msra.mxu1 %v2211_v61  ;;  %v612_v9 = vpop.f32.mrb[19].mxu0  ;;  %v1248_v0 = vld [vmem:[%s3962_s3 + $0x598] sm:$0xff] }
 0x131   : > { %v772_v31 = vadd.f32 %v771_v8, %v3492_v16  ;;  %v613_v42 = vadd.f32 %v612_v9, %v3497_v21  ;;  %v773_v18 = vpop.f32.mrb[19].mxu1  ;;  %1385 = vmatprep.mubr.f32.mxu0 %v1022_v4  ;;  %2214 = vmatprep.subr.bf16.mxu1 %v2213_v62  ;;  %v1243_v62 = vld [vmem:[%s3962_s3 + $0x570] sm:$0xff] }
 0x132   : > { %v774_v25 = vadd.f32 %v773_v18, %v3500_v47  ;;  %1546 = vmatprep.mubr.f32.mxu1 %v1024_v14  ;;  %1386 = vmatmul.mubr.f32.gmra.mrb[80].mxu0 %v1021_v5  ;;  %v1027_v36 = vmax.f32 %v611_v17, 0.0  ;;  %v2227_v8 = vpack.c.bf16 %v1243_v62, %v1241_v52  ;;  %v1245_v18 = vld [vmem:[%s3962_s3 + $0x580] sm:$0xff] }
 0x133   : > { %v1028_v34 = vmax.f32 %v613_v42, 0.0  ;;  %1547 = vmatmul.mubr.f32.gmra.mrb[48].mxu1 %v1023_v27  ;;  %v616_v24 = vpop.f32.mrb[20].mxu0  ;;  %v1029_v43 = vmax.f32 %v772_v31, 0.0  ;;  %v2229_v42 = vpack.c.bf16 %v1248_v0, %v1246_v1  ;;  %v1258_v1 = vld [vmem:[%s3962_s3 + $0x5e8] sm:$0xff]  ;;  %v1260_v0 = vld [vmem:[%s3962_s3 + $0x5f8] sm:$0xff] }
 0x134   : > { %v1030_v26 = vmax.f32 %v774_v25, 0.0  ;;  %v617_v35 = vadd.f32 %v616_v24, %v3489_v56  ;;  %v777_v39 = vpop.f32.mrb[20].mxu1  ;;  %2216 = vmatpush1.bf16.msra.mxu1 %v2215_v11  ;;  %v618_v37 = vpop.f32.mrb[21].mxu0  ;;  %v1252_v25 = vld [vmem:[%s3962_s3 + $0x5b8] sm:$0xff] }
 0x135   : > { %v778_v32 = vadd.f32 %v777_v39, %v3492_v16  ;;  %v619_v33 = vadd.f32 %v618_v37, %v3497_v21  ;;  %v779_v55 = vpop.f32.mrb[21].mxu1  ;;  %1391 = vmatprep.mubr.f32.mxu0 %v1028_v34  ;;  %2218 = vmatprep.subr.bf16.mxu1 %v2217_v19  ;;  %v1247_v19 = vld [vmem:[%s3962_s3 + $0x590] sm:$0xff]  ;;  %v1249_v37 = vld [vmem:[%s3962_s3 + $0x5a0] sm:$0xff] }
 0x136   : > { %v780_v50 = vadd.f32 %v779_v55, %v3500_v47  ;;  %1552 = vmatprep.mubr.f32.mxu1 %v1030_v26  ;;  %1392 = vmatmul.mubr.f32.gmra.mrb[82].mxu0 %v1027_v36  ;;  %v1033_v40 = vmax.f32 %v617_v35, 0.0  ;;  %v2231_v39 = vpack.c.bf16 %v1247_v19, %v1245_v18  ;;  %v2241_v19 = vpack.c.bf16 %v1260_v0, %v1258_v1 }
 0x137   : > { %v1034_v10 = vmax.f32 %v619_v33, 0.0  ;;  %1553 = vmatmul.mubr.f32.gmra.mrb[50].mxu1 %v1029_v43  ;;  %v622_v54 = vpop.f32.mrb[22].mxu0  ;;  %v1035_v60 = vmax.f32 %v778_v32, 0.0 }
 0x138   : > { %v1036_v41 = vmax.f32 %v780_v50, 0.0  ;;  %v623_v57 = vadd.f32 %v622_v54, %v3489_v56  ;;  %v783_v23 = vpop.f32.mrb[22].mxu1  ;;  %2220 = vmatpush1.bf16.msra.mxu1 %v2219_v38  ;;  %v624_v28 = vpop.f32.mrb[23].mxu0  ;;  %v1251_v38 = vld [vmem:[%s3962_s3 + $0x5b0] sm:$0xff]  ;;  %v1256_v50 = vld [vmem:[%s3962_s3 + $0x5d8] sm:$0xff]  ;;  %v429_v54 = vsub.s32 4, %v3475_v12 }
 0x139   : > { %v784_v61 = vadd.f32 %v783_v23, %v3492_v16  ;;  %v625_v51 = vadd.f32 %v624_v28, %v3497_v21  ;;  %v785_v45 = vpop.f32.mrb[23].mxu1  ;;  %1397 = vmatprep.mubr.f32.mxu0 %v1034_v10  ;;  %2222 = vmatprep.subr.bf16.mxu1 %v2221_v58  ;;  %v2233_v58 = vpack.c.bf16 %v1252_v25, %v1250_v22 }
 0x13a   : > { %v786_v63 = vadd.f32 %v785_v45, %v3500_v47  ;;  %1558 = vmatprep.mubr.f32.mxu1 %v1036_v41  ;;  %1398 = vmatmul.mubr.f32.gmra.mrb[84].mxu0 %v1033_v40  ;;  %v1039_v4 = vmax.f32 %v623_v57, 0.0  ;;  %v2235_v10 = vpack.c.bf16 %v1251_v38, %v1249_v37  ;;  %v1253_v40 = vld [vmem:[%s3962_s3 + $0x5c0] sm:$0xff]  ;;  %v2237_v62 = vpack.c.bf16 %v1256_v50, %v1254_v48 }
 0x13b   : > { %v1040_v3 = vmax.f32 %v625_v51, 0.0  ;;  %1559 = vmatmul.mubr.f32.gmra.mrb[52].mxu1 %v1035_v60  ;;  %v628_v2 = vpop.f32.mrb[24].mxu0  ;;  %v1041_v9 = vmax.f32 %v784_v61, 0.0  ;;  %v1255_v60 = vld [vmem:[%s3962_s3 + $0x5d0] sm:$0xff]  ;;  %v433_v61 = vsub.s32 5, %v3475_v12 }
 0x13c   : > { %v1042_v6 = vmax.f32 %v786_v63, 0.0  ;;  %v629_v5 = vadd.f32 %v628_v2, %v3489_v56  ;;  %v789_v14 = vpop.f32.mrb[24].mxu1  ;;  %2224 = vmatpush1.bf16.msra.mxu1 %v2223_v59  ;;  %v630_v17 = vpop.f32.mrb[25].mxu0 }
 0x13d   : > { %v790_v11 = vadd.f32 %v789_v14, %v3492_v16  ;;  %v631_v27 = vadd.f32 %v630_v17, %v3497_v21  ;;  %v791_v31 = vpop.f32.mrb[25].mxu1  ;;  %1403 = vmatprep.mubr.f32.mxu0 %v1040_v3  ;;  %2226 = vmatprep.subr.bf16.mxu1 %v2225_v49 }
 0x13e   : > { %v792_v20 = vadd.f32 %v791_v31, %v3500_v47  ;;  %1564 = vmatprep.mubr.f32.mxu1 %v1042_v6  ;;  %1404 = vmatmul.mubr.f32.gmra.mrb[86].mxu0 %v1039_v4  ;;  %v1045_v34 = vmax.f32 %v629_v5, 0.0  ;;  %v3745_v4 = vrot.slane %v3481_v15, %v429_v54  ;;  %v2239_v6 = vpack.c.bf16 %v1255_v60, %v1253_v40 }
 0x13f   : > { %v1046_v29 = vmax.f32 %v631_v27, 0.0  ;;  %1565 = vmatmul.mubr.f32.gmra.mrb[54].mxu1 %v1041_v9  ;;  %v634_v30 = vpop.f32.mrb[26].mxu0  ;;  %v1047_v43 = vmax.f32 %v790_v11, 0.0  ;;  %v3749_v11 = vrot.slane %v3481_v15, %v433_v61 }
 0x140   : > { %v1048_v24 = vmax.f32 %v792_v20, 0.0  ;;  %v635_v36 = vadd.f32 %v634_v30, %v3489_v56  ;;  %v795_v26 = vpop.f32.mrb[26].mxu1  ;;  %2228 = vmatpush1.bf16.msra.mxu1 %v2227_v8  ;;  %v636_v35 = vpop.f32.mrb[27].mxu0  ;;  %v1257_v20 = vld [vmem:[%s3962_s3 + $0x5e0] sm:$0xff] }
 0x141   : > { %v796_v32 = vadd.f32 %v795_v26, %v3492_v16  ;;  %v637_v33 = vadd.f32 %v636_v35, %v3497_v21  ;;  %v797_v55 = vpop.f32.mrb[27].mxu1  ;;  %1409 = vmatprep.mubr.f32.mxu0 %v1046_v29  ;;  %2230 = vmatprep.subr.bf16.mxu1 %v2229_v42 }
 0x142   : > { %v798_v44 = vadd.f32 %v797_v55, %v3500_v47  ;;  %1570 = vmatprep.mubr.f32.mxu1 %v1048_v24  ;;  %1410 = vmatmul.mubr.f32.gmra.mrb[88].mxu0 %v1045_v34  ;;  %v1051_v41 = vmax.f32 %v635_v36, 0.0 }
 0x143   : > { %v1052_v53 = vmax.f32 %v637_v33, 0.0  ;;  %1571 = vmatmul.mubr.f32.gmra.mrb[56].mxu1 %v1047_v43  ;;  %v640_v7 = vpop.f32.mrb[28].mxu0  ;;  %v1053_v51 = vmax.f32 %v796_v32, 0.0 }
 0x144   : > { %v1054_v57 = vmax.f32 %v798_v44, 0.0  ;;  %v641_v23 = vadd.f32 %v640_v7, %v3489_v56  ;;  %v801_v28 = vpop.f32.mrb[28].mxu1  ;;  %2232 = vmatpush1.bf16.msra.mxu1 %v2231_v39  ;;  %v642_v59 = vpop.f32.mrb[29].mxu0 }
 0x145   : > { %v802_v45 = vadd.f32 %v801_v28, %v3492_v16  ;;  %v643_v49 = vadd.f32 %v642_v59, %v3497_v21  ;;  %v803_v52 = vpop.f32.mrb[29].mxu1  ;;  %1415 = vmatprep.mubr.f32.mxu0 %v1052_v53  ;;  %2234 = vmatprep.subr.bf16.mxu1 %v2233_v58 }
 0x146   : > { %v804_v63 = vadd.f32 %v803_v52, %v3500_v47  ;;  %1576 = vmatprep.mubr.f32.mxu1 %v1054_v57  ;;  %1416 = vmatmul.mubr.f32.gmra.mrb[90].mxu0 %v1051_v41  ;;  %v1057_v5 = vmax.f32 %v641_v23, 0.0 }
 0x147   : > { %v1058_v3 = vmax.f32 %v643_v49, 0.0  ;;  %1577 = vmatmul.mubr.f32.gmra.mrb[58].mxu1 %v1053_v51  ;;  %v646_v2 = vpop.f32.mrb[30].mxu0  ;;  %v1059_v27 = vmax.f32 %v802_v45, 0.0 }
 0x148   : > { %v1060_v14 = vmax.f32 %v804_v63, 0.0  ;;  %v647_v17 = vadd.f32 %v646_v2, %v3489_v56  ;;  %v807_v8 = vpop.f32.mrb[30].mxu1  ;;  %2236 = vmatpush1.bf16.msra.mxu1 %v2235_v10  ;;  %v648_v9 = vpop.f32.mrb[31].mxu0  ;;  %v1259_v56 = vld [vmem:[%s3962_s3 + $0x5f0] sm:$0xff] }
 0x149   : > { %v808_v31 = vadd.f32 %v807_v8, %v3492_v16  ;;  %v649_v42 = vadd.f32 %v648_v9, %v3497_v21  ;;  %v809_v18 = vpop.f32.mrb[31].mxu1  ;;  %1421 = vmatprep.mubr.f32.mxu0 %v1058_v3  ;;  %2238 = vmatprep.subr.bf16.mxu1 %v2237_v62  ;;  %v2243_v30 = vpack.c.bf16 %v1259_v56, %v1257_v20 }
 0x14a   : > { %v810_v15 = vadd.f32 %v809_v18, %v3500_v47  ;;  %1582 = vmatprep.mubr.f32.mxu1 %v1060_v14  ;;  %1422 = vmatmul.mubr.f32.gmra.mrb[92].mxu0 %v1057_v5  ;;  %v1063_v21 = vmax.f32 %v647_v17, 0.0 }
 0x14b   : > { %v1064_v22 = vmax.f32 %v649_v42, 0.0  ;;  %1583 = vmatmul.mubr.f32.gmra.mrb[60].mxu1 %v1059_v27  ;;  %v878_v16 = vpop.f32.mrb[32].mxu0  ;;  %v1065_v34 = vmax.f32 %v808_v31, 0.0 }
 0x14c   : > { %v1066_v25 = vmax.f32 %v810_v15, 0.0  ;;  %2240 = vmatpush1.bf16.msra.mxu1 %v2239_v6  ;;  %v880_v29 = vpop.f32.mrb[33].mxu0  ;;  %v879_v24 = vadd.f32 %v878_v16, %v3745_v4 }
 0x14d   : > { %v881_v36 = vadd.f32 %v880_v29, %v3749_v11  ;;  %1427 = vmatprep.mubr.f32.mxu0 %v1064_v22  ;;  %2242 = vmatprep.subr.bf16.mxu1 %v2241_v19 }
 0x14e   : > { %1588 = vmatprep.mubr.f32.mxu1 %v1066_v25  ;;  %1428 = vmatmul.mubr.f32.gmra.mrb[94].mxu0 %v1063_v21  ;;  %v977_v39 = vmax.f32 %v879_v24, 0.0 }
 0x14f   : > { %v978_v47 = vmax.f32 %v881_v36, 0.0  ;;  %1589 = vmatmul.mubr.f32.gmra.mrb[62].mxu1 %v1065_v34  ;;  %v884_v26 = vpop.f32.mrb[34].mxu0 }
 0x150   : > { %2244 = vmatpush1.bf16.msra.mxu1 %v2243_v30  ;;  %v886_v35 = vpop.f32.mrb[35].mxu0  ;;  %v885_v37 = vadd.f32 %v884_v26, %v3745_v4 }
 0x151   : > { %v887_v38 = vadd.f32 %v886_v35, %v3749_v11  ;;  %1659 = vmatprep.mubr.f32.mxu1 %v978_v47 }
 0x152   : > { %v983_v55 = vmax.f32 %v885_v37, 0.0 }
 0x153   : > { %v984_v43 = vmax.f32 %v887_v38, 0.0  ;;  %1660 = vmatmul.mubr.f32.vlgmr.msra.gmra.mrb[32].mxu1 %v977_v39  ;;  %v890_v32 = vpop.f32.mrb[36].mxu0 }
 0x154   : > { %v892_v33 = vpop.f32.mrb[37].mxu0  ;;  %v891_v58 = vadd.f32 %v890_v32, %v3745_v4 }
 0x155   : > { %v893_v44 = vadd.f32 %v892_v33, %v3749_v11  ;;  %1665 = vmatprep.mubr.f32.mxu1 %v984_v43 }
 0x156   : > { %v989_v7 = vmax.f32 %v891_v58, 0.0 }
 0x157   : > { %v990_v48 = vmax.f32 %v893_v44, 0.0  ;;  %1666 = vmatmul.mubr.f32.gmra.mrb[34].mxu1 %v983_v55  ;;  %v896_v50 = vpop.f32.mrb[38].mxu0 }
 0x158   : > { %v898_v53 = vpop.f32.mrb[39].mxu0  ;;  %v897_v10 = vadd.f32 %v896_v50, %v3745_v4 }
 0x159   : > { %v899_v54 = vadd.f32 %v898_v53, %v3749_v11  ;;  %1671 = vmatprep.mubr.f32.mxu1 %v990_v48 }
 0x15a   : > { %v995_v23 = vmax.f32 %v897_v10, 0.0 }
 0x15b   : > { %v996_v40 = vmax.f32 %v899_v54, 0.0  ;;  %1672 = vmatmul.mubr.f32.gmra.mrb[36].mxu1 %v989_v7  ;;  %v902_v41 = vpop.f32.mrb[40].mxu0 }
 0x15c   : > { %v904_v57 = vpop.f32.mrb[41].mxu0  ;;  %v903_v28 = vadd.f32 %v902_v41, %v3745_v4 }
 0x15d   : > { %v905_v59 = vadd.f32 %v904_v57, %v3749_v11  ;;  %1677 = vmatprep.mubr.f32.mxu1 %v996_v40 }
 0x15e   : > { %v1001_v45 = vmax.f32 %v903_v28, 0.0 }
 0x15f   : > { %v1002_v60 = vmax.f32 %v905_v59, 0.0  ;;  %1678 = vmatmul.mubr.f32.gmra.mrb[38].mxu1 %v995_v23  ;;  %v908_v61 = vpop.f32.mrb[42].mxu0 }
 0x160   : > { %v910_v51 = vpop.f32.mrb[43].mxu0  ;;  %v909_v49 = vadd.f32 %v908_v61, %v3745_v4 }
 0x161   : > { %v911_v52 = vadd.f32 %v910_v51, %v3749_v11  ;;  %1683 = vmatprep.mubr.f32.mxu1 %v1002_v60 }
 0x162   : > { %v1007_v0 = vmax.f32 %v909_v49, 0.0 }
 0x163   : > { %v1008_v62 = vmax.f32 %v911_v52, 0.0  ;;  %1684 = vmatmul.mubr.f32.gmra.mrb[40].mxu1 %v1001_v45  ;;  %v914_v63 = vpop.f32.mrb[44].mxu0 }
 0x164   : > { %v916_v1 = vpop.f32.mrb[45].mxu0  ;;  %v915_v3 = vadd.f32 %v914_v63, %v3745_v4 }
 0x165   : > { %v917_v2 = vadd.f32 %v916_v1, %v3749_v11  ;;  %1689 = vmatprep.mubr.f32.mxu1 %v1008_v62 }
 0x166   : > { %v1013_v17 = vmax.f32 %v915_v3, 0.0 }
 0x167   : > { %v1014_v6 = vmax.f32 %v917_v2, 0.0  ;;  %1690 = vmatmul.mubr.f32.gmra.mrb[42].mxu1 %v1007_v0  ;;  %v920_v5 = vpop.f32.mrb[46].mxu0 }
 0x168   : > { %v922_v14 = vpop.f32.mrb[47].mxu0  ;;  %v921_v8 = vadd.f32 %v920_v5, %v3745_v4 }
 0x169   : > { %v923_v9 = vadd.f32 %v922_v14, %v3749_v11  ;;  %1695 = vmatprep.mubr.f32.mxu1 %v1014_v6 }
 0x16a   : > { %v1019_v18 = vmax.f32 %v921_v8, 0.0 }
 0x16b   : > { %v1020_v27 = vmax.f32 %v923_v9, 0.0  ;;  %1696 = vmatmul.mubr.f32.gmra.mrb[44].mxu1 %v1013_v17  ;;  %v926_v31 = vpop.f32.mrb[48].mxu0 }
 0x16c   : > { %v928_v42 = vpop.f32.mrb[49].mxu0  ;;  %v927_v19 = vadd.f32 %v926_v31, %v3745_v4 }
 0x16d   : > { %v929_v20 = vadd.f32 %v928_v42, %v3749_v11  ;;  %1701 = vmatprep.mubr.f32.mxu1 %v1020_v27 }
 0x16e   : > { %v1025_v16 = vmax.f32 %v927_v19, 0.0 }
 0x16f   : > { %v1026_v56 = vmax.f32 %v929_v20, 0.0  ;;  %1702 = vmatmul.mubr.f32.gmra.mrb[46].mxu1 %v1019_v18  ;;  %v932_v15 = vpop.f32.mrb[50].mxu0 }
 0x170   : > { %v934_v22 = vpop.f32.mrb[51].mxu0  ;;  %v933_v21 = vadd.f32 %v932_v15, %v3745_v4 }
 0x171   : > { %v935_v25 = vadd.f32 %v934_v22, %v3749_v11  ;;  %1707 = vmatprep.mubr.f32.mxu1 %v1026_v56 }
 0x172   : > { %v1031_v24 = vmax.f32 %v933_v21, 0.0 }
 0x173   : > { %v1032_v29 = vmax.f32 %v935_v25, 0.0  ;;  %1708 = vmatmul.mubr.f32.gmra.mrb[48].mxu1 %v1025_v16  ;;  %v938_v30 = vpop.f32.mrb[52].mxu0 }
 0x174   : > { %v940_v34 = vpop.f32.mrb[53].mxu0  ;;  %v939_v36 = vadd.f32 %v938_v30, %v3745_v4 }
 0x175   : > { %v941_v47 = vadd.f32 %v940_v34, %v3749_v11  ;;  %1713 = vmatprep.mubr.f32.mxu1 %v1032_v29 }
 0x176   : > { %v1037_v37 = vmax.f32 %v939_v36, 0.0 }
 0x177   : > { %v1038_v26 = vmax.f32 %v941_v47, 0.0  ;;  %1714 = vmatmul.mubr.f32.gmra.mrb[50].mxu1 %v1031_v24  ;;  %v944_v35 = vpop.f32.mrb[54].mxu0 }
 0x178   : > { %v946_v39 = vpop.f32.mrb[55].mxu0  ;;  %v945_v38 = vadd.f32 %v944_v35, %v3745_v4 }
 0x179   : > { %v947_v43 = vadd.f32 %v946_v39, %v3749_v11  ;;  %1719 = vmatprep.mubr.f32.mxu1 %v1038_v26  ;;  %v1261_v26 = vld [vmem:[%s3963_s4] sm:$0x3] }
 0x17a   : > { %v1043_v58 = vmax.f32 %v945_v38, 0.0  ;;  %v3837_v39 = vrot.slane %v1261_v26, %v413_v13  ;;  %v3843_v38 = vrot.slane %v1261_v26, %v417_v46 }
 0x17b   : > { %v1044_v32 = vmax.f32 %v947_v43, 0.0  ;;  %1720 = vmatmul.mubr.f32.gmra.mrb[52].mxu1 %v1037_v37  ;;  %v950_v33 = vpop.f32.mrb[56].mxu0 }
 0x17c   : > { %v952_v55 = vpop.f32.mrb[57].mxu0  ;;  %v951_v44 = vadd.f32 %v950_v33, %v3745_v4 }
 0x17d   : > { %v953_v48 = vadd.f32 %v952_v55, %v3749_v11  ;;  %1725 = vmatprep.mubr.f32.mxu1 %v1044_v32 }
 0x17e   : > { %v1049_v10 = vmax.f32 %v951_v44, 0.0 }
 0x17f   : > { %v1050_v50 = vmax.f32 %v953_v48, 0.0  ;;  %1726 = vmatmul.mubr.f32.gmra.mrb[54].mxu1 %v1043_v58  ;;  %v956_v53 = vpop.f32.mrb[58].mxu0 }
 0x180   : > { %v958_v7 = vpop.f32.mrb[59].mxu0  ;;  %v957_v54 = vadd.f32 %v956_v53, %v3745_v4 }
 0x181   : > { %v959_v40 = vadd.f32 %v958_v7, %v3749_v11  ;;  %1731 = vmatprep.mubr.f32.mxu1 %v1050_v50 }
 0x182   : > { %v1055_v28 = vmax.f32 %v957_v54, 0.0 }
 0x183   : > { %v1056_v41 = vmax.f32 %v959_v40, 0.0  ;;  %1732 = vmatmul.mubr.f32.gmra.mrb[56].mxu1 %v1049_v10  ;;  %v962_v57 = vpop.f32.mrb[60].mxu0 }
 0x184   : > { %v964_v23 = vpop.f32.mrb[61].mxu0  ;;  %v963_v59 = vadd.f32 %v962_v57, %v3745_v4 }
 0x185   : > { %v965_v60 = vadd.f32 %v964_v23, %v3749_v11  ;;  %1737 = vmatprep.mubr.f32.mxu1 %v1056_v41 }
 0x186   : > { %v1061_v49 = vmax.f32 %v963_v59, 0.0 }
 0x187   : > { %v1062_v61 = vmax.f32 %v965_v60, 0.0  ;;  %1738 = vmatmul.mubr.f32.gmra.mrb[58].mxu1 %v1055_v28  ;;  %v968_v51 = vpop.f32.mrb[62].mxu0 }
 0x188   : > { %v970_v45 = vpop.f32.mrb[63].mxu0  ;;  %v969_v52 = vadd.f32 %v968_v51, %v3745_v4 }
 0x189   : > { %v971_v62 = vadd.f32 %v970_v45, %v3749_v11  ;;  %1743 = vmatprep.mubr.f32.mxu1 %v1062_v61 }
 0x18a   : > { %v1067_v1 = vmax.f32 %v969_v52, 0.0 }
 0x18b   : > { %v1068_v63 = vmax.f32 %v971_v62, 0.0  ;;  %1744 = vmatmul.mubr.f32.gmra.mrb[60].mxu1 %v1061_v49 }
 0x18d   : > { %1749 = vmatprep.mubr.f32.mxu1 %v1068_v63 }
 0x18f   : > { %1750 = vmatmul.mubr.f32.gmra.mrb[62].mxu1 %v1067_v1 }
 0x1e5   : > { %v1339_v0 = vpop.f32.mrb[64].mxu0 }
 0x1e6   : > { %v1341_v3 = vpop.f32.mrb[65].mxu0  ;;  %v1340_v32 = vadd.f32 %v1339_v0, %v3837_v39 }
 0x1e7   : > { %v1342_v33 = vadd.f32 %v1341_v3, %v3843_v38 }
 0x1e9   : > { %v1345_v2 = vpop.f32.mrb[66].mxu0 }
 0x1ea   : > { %v1347_v6 = vpop.f32.mrb[67].mxu0  ;;  %v1346_v58 = vadd.f32 %v1345_v2, %v3837_v39 }
 0x1eb   : > { %v1348_v44 = vadd.f32 %v1347_v6, %v3843_v38 }
 0x1ed   : > { %v1351_v5 = vpop.f32.mrb[68].mxu0 }
 0x1ee   : > { %v1353_v14 = vpop.f32.mrb[69].mxu0  ;;  %v1352_v10 = vadd.f32 %v1351_v5, %v3837_v39 }
 0x1ef   : > { %v1354_v54 = vadd.f32 %v1353_v14, %v3843_v38 }
 0x1f1   : > { %v1357_v17 = vpop.f32.mrb[70].mxu0 }
 0x1f2   : > { %v1359_v8 = vpop.f32.mrb[71].mxu0  ;;  %v1358_v28 = vadd.f32 %v1357_v17, %v3837_v39 }
 0x1f3   : > { %v1360_v59 = vadd.f32 %v1359_v8, %v3843_v38 }
 0x1f5   : > { %v1363_v9 = vpop.f32.mrb[72].mxu0 }
 0x1f6   : > { %v1365_v27 = vpop.f32.mrb[73].mxu0  ;;  %v1364_v49 = vadd.f32 %v1363_v9, %v3837_v39 }
 0x1f7   : > { %v1366_v52 = vadd.f32 %v1365_v27, %v3843_v38 }
 0x1f9   : > { %v3792_v31 = vpop.f32.mrb[74].mxu0 }
 0x1fa   : > { %v3794_v4 = vpop.f32.mrb[75].mxu0  ;;  %v1370_v3 = vadd.f32 %v3792_v31, %v3837_v39 }
 0x1fb   : > { %v1372_v2 = vadd.f32 %v3794_v4, %v3843_v38 }
 0x1fd   : > { %v3796_v11 = vpop.f32.mrb[76].mxu0 }
 0x1fe   : > { %v3798_v42 = vpop.f32.mrb[77].mxu0  ;;  %v1376_v8 = vadd.f32 %v3796_v11, %v3837_v39 }
 0x1ff   : > { %v1378_v9 = vadd.f32 %v3798_v42, %v3843_v38 }
 0x201   : > { %v3800_v18 = vpop.f32.mrb[78].mxu0 }
 0x202   : > { %v3802_v19 = vpop.f32.mrb[79].mxu0 }
 0x203   : > { %v1384_v11 = vadd.f32 %v3802_v19, %v3843_v38 }
 0x205   : > { %v3804_v20 = vpop.f32.mrb[80].mxu0 }
 0x206   : > { %v3806_v56 = vpop.f32.mrb[81].mxu0 }
 0x209   : > { %v3808_v15 = vpop.f32.mrb[82].mxu0 }
 0x20a   : > { %v3810_v22 = vpop.f32.mrb[83].mxu0 }
 0x20d   : > { %v3812_v16 = vpop.f32.mrb[84].mxu0 }
 0x20e   : > { %v3814_v21 = vpop.f32.mrb[85].mxu0 }
 0x211   : > { %v3816_v25 = vpop.f32.mrb[86].mxu0 }
 0x212   : > { %v3818_v29 = vpop.f32.mrb[87].mxu0 }
 0x215   : > { %v3820_v30 = vpop.f32.mrb[88].mxu0 }
 0x216   : > { %v3822_v34 = vpop.f32.mrb[89].mxu0 }
 0x219   : > { %v3824_v24 = vpop.f32.mrb[90].mxu0 }
 0x21a   : > { %v3826_v36 = vpop.f32.mrb[91].mxu0 }
 0x21d   : > { %v3828_v47 = vpop.f32.mrb[92].mxu0 }
 0x21e   : > { %v3833_v35 = vpop.f32.mrb[93].mxu0 }
 0x221   : > { %v3839_v37 = vpop.f32.mrb[94].mxu0 }
 0x222   : > { %v3845_v43 = vpop.f32.mrb[95].mxu0 }
 0x226   : > { %v1661_v13 = vpop.f32.mrb[32].mxu1 }
 0x227   : > { %v2246_v12 = vadd.f32 %v1661_v13, %v1340_v32  ;;  %v1663_v46 = vpop.f32.mrb[33].mxu1  ;;  %v1382_v32 = vadd.f32 %v3800_v18, %v3837_v39  ;;  %v1390_v18 = vadd.f32 %v3806_v56, %v3843_v38 }
 0x228   : > { %v2248_v55 = vadd.f32 %v1663_v46, %v1342_v33  ;;  %v1388_v46 = vadd.f32 %v3804_v20, %v3837_v39  ;;  %v1396_v20 = vadd.f32 %v3810_v22, %v3843_v38 }
 0x229   : > { %1756 = vst [vmem:[%s3854_s25] sm:$0xff] %v2246_v12 }
 0x22a   : > { %1757 = vst.msk [vmem:[%s3854_s25 + $0x8] sm:$0xff] %vm441_vm0, %v2248_v55  ;;  %v1667_v48 = vpop.f32.mrb[34].mxu1 }
 0x22b   : > { %v2250_v50 = vadd.f32 %v1667_v48, %v1346_v58  ;;  %v1669_v53 = vpop.f32.mrb[35].mxu1  ;;  %v1394_v48 = vadd.f32 %v3808_v15, %v3837_v39  ;;  %v1402_v15 = vadd.f32 %v3814_v21, %v3843_v38 }
 0x22c   : > { %v2252_v7 = vadd.f32 %v1669_v53, %v1348_v44 }
 0x22d   : > { %1758 = vst [vmem:[%s3854_s25 + $0x10] sm:$0xff] %v2250_v50 }
 0x22e   : > { %1759 = vst.msk [vmem:[%s3854_s25 + $0x18] sm:$0xff] %vm441_vm0, %v2252_v7  ;;  %v1673_v40 = vpop.f32.mrb[36].mxu1 }
 0x22f   : > { %v2254_v41 = vadd.f32 %v1673_v40, %v1352_v10  ;;  %v1675_v57 = vpop.f32.mrb[37].mxu1  ;;  %v1400_v10 = vadd.f32 %v3812_v16, %v3837_v39  ;;  %v1408_v16 = vadd.f32 %v3818_v29, %v3843_v38 }
 0x230   : > { %v2256_v23 = vadd.f32 %v1675_v57, %v1354_v54  ;;  %v1406_v57 = vadd.f32 %v3816_v25, %v3837_v39  ;;  %v1414_v25 = vadd.f32 %v3822_v34, %v3843_v38 }
 0x231   : > { %1760 = vst [vmem:[%s3854_s25 + $0x20] sm:$0xff] %v2254_v41 }
 0x232   : > { %1761 = vst.msk [vmem:[%s3854_s25 + $0x28] sm:$0xff] %vm441_vm0, %v2256_v23  ;;  %v1679_v60 = vpop.f32.mrb[38].mxu1 }
 0x233   : > { %v2258_v61 = vadd.f32 %v1679_v60, %v1358_v28  ;;  %v1681_v51 = vpop.f32.mrb[39].mxu1  ;;  %v1412_v60 = vadd.f32 %v3820_v30, %v3837_v39  ;;  %v1420_v30 = vadd.f32 %v3826_v36, %v3843_v38 }
 0x234   : > { %v2260_v45 = vadd.f32 %v1681_v51, %v1360_v59 }
 0x235   : > { %1762 = vst [vmem:[%s3854_s25 + $0x30] sm:$0xff] %v2258_v61 }
 0x236   : > { %1763 = vst.msk [vmem:[%s3854_s25 + $0x38] sm:$0xff] %vm441_vm0, %v2260_v45  ;;  %v1685_v62 = vpop.f32.mrb[40].mxu1 }
 0x237   : > { %v2262_v63 = vadd.f32 %v1685_v62, %v1364_v49  ;;  %v1687_v1 = vpop.f32.mrb[41].mxu1  ;;  %v1418_v49 = vadd.f32 %v3824_v24, %v3837_v39  ;;  %v1426_v24 = vadd.f32 %v3833_v35, %v3843_v38 }
 0x238   : > { %v2264_v0 = vadd.f32 %v1687_v1, %v1366_v52  ;;  %v1424_v1 = vadd.f32 %v3828_v47, %v3837_v39 }
 0x239   : > { %1764 = vst [vmem:[%s3854_s25 + $0x40] sm:$0xff] %v2262_v63 }
 0x23a   : > { %1765 = vst.msk [vmem:[%s3854_s25 + $0x48] sm:$0xff] %vm441_vm0, %v2264_v0  ;;  %v1691_v6 = vpop.f32.mrb[42].mxu1 }
 0x23b   : > { %v2266_v5 = vadd.f32 %v1691_v6, %v1370_v3  ;;  %v1693_v14 = vpop.f32.mrb[43].mxu1  ;;  %v1430_v6 = vadd.f32 %v3839_v37, %v3837_v39 }
 0x23c   : > { %v2268_v17 = vadd.f32 %v1693_v14, %v1372_v2 }
 0x23d   : > { %1766 = vst [vmem:[%s3854_s25 + $0x50] sm:$0xff] %v2266_v5  ;;  %v1432_v5 = vadd.f32 %v3845_v43, %v3843_v38 }
 0x23e   : > { %1767 = vst.msk [vmem:[%s3854_s25 + $0x58] sm:$0xff] %vm441_vm0, %v2268_v17  ;;  %v1697_v27 = vpop.f32.mrb[44].mxu1 }
 0x23f   : > { %v2270_v31 = vadd.f32 %v1697_v27, %v1376_v8  ;;  %v1699_v4 = vpop.f32.mrb[45].mxu1 }
 0x240   : > { %v2272_v26 = vadd.f32 %v1699_v4, %v1378_v9 }
 0x241   : > { %1768 = vst [vmem:[%s3854_s25 + $0x60] sm:$0xff] %v2270_v31 }
 0x242   : > { %1769 = vst.msk [vmem:[%s3854_s25 + $0x68] sm:$0xff] %vm441_vm0, %v2272_v26  ;;  %v1703_v33 = vpop.f32.mrb[46].mxu1 }
 0x243   : > { %v2274_v42 = vadd.f32 %v1703_v33, %v1382_v32  ;;  %v1705_v13 = vpop.f32.mrb[47].mxu1 }
 0x244   : > { %v2276_v12 = vadd.f32 %v1705_v13, %v1384_v11 }
 0x245   : > { %1770 = vst [vmem:[%s3854_s25 + $0x70] sm:$0xff] %v2274_v42 }
 0x246   : > { %1771 = vst.msk [vmem:[%s3854_s25 + $0x78] sm:$0xff] %vm441_vm0, %v2276_v12  ;;  %v1709_v55 = vpop.f32.mrb[48].mxu1 }
 0x247   : > { %v2278_v19 = vadd.f32 %v1709_v55, %v1388_v46  ;;  %v1711_v58 = vpop.f32.mrb[49].mxu1 }
 0x248   : > { %v2280_v44 = vadd.f32 %v1711_v58, %v1390_v18 }
 0x249   : > { %1772 = vst [vmem:[%s3854_s25 + $0x80] sm:$0xff] %v2278_v19 }
 0x24a   : > { %1773 = vst.msk [vmem:[%s3854_s25 + $0x88] sm:$0xff] %vm441_vm0, %v2280_v44  ;;  %v1715_v50 = vpop.f32.mrb[50].mxu1 }
 0x24b   : > { %v2282_v56 = vadd.f32 %v1715_v50, %v1394_v48  ;;  %v1717_v53 = vpop.f32.mrb[51].mxu1 }
 0x24c   : > { %v2284_v7 = vadd.f32 %v1717_v53, %v1396_v20 }
 0x24d   : > { %1774 = vst [vmem:[%s3854_s25 + $0x90] sm:$0xff] %v2282_v56 }
 0x24e   : > { %1775 = vst.msk [vmem:[%s3854_s25 + $0x98] sm:$0xff] %vm441_vm0, %v2284_v7  ;;  %v1721_v54 = vpop.f32.mrb[52].mxu1 }
 0x24f   : > { %v2286_v22 = vadd.f32 %v1721_v54, %v1400_v10  ;;  %v1723_v40 = vpop.f32.mrb[53].mxu1 }
 0x250   : > { %v2288_v41 = vadd.f32 %v1723_v40, %v1402_v15 }
 0x251   : > { %1776 = vst [vmem:[%s3854_s25 + $0xa0] sm:$0xff] %v2286_v22 }
 0x252   : > { %1777 = vst.msk [vmem:[%s3854_s25 + $0xa8] sm:$0xff] %vm441_vm0, %v2288_v41  ;;  %v1727_v23 = vpop.f32.mrb[54].mxu1 }
 0x253   : > { %v2290_v21 = vadd.f32 %v1727_v23, %v1406_v57  ;;  %v1729_v28 = vpop.f32.mrb[55].mxu1 }
 0x254   : > { %v2292_v59 = vadd.f32 %v1729_v28, %v1408_v16 }
 0x255   : > { %1778 = vst [vmem:[%s3854_s25 + $0xb0] sm:$0xff] %v2290_v21 }
 0x256   : > { %1779 = vst.msk [vmem:[%s3854_s25 + $0xb8] sm:$0xff] %vm441_vm0, %v2292_v59  ;;  %v1733_v61 = vpop.f32.mrb[56].mxu1 }
 0x257   : > { %v2294_v29 = vadd.f32 %v1733_v61, %v1412_v60  ;;  %v1735_v51 = vpop.f32.mrb[57].mxu1 }
 0x258   : > { %v2296_v45 = vadd.f32 %v1735_v51, %v1414_v25 }
 0x259   : > { %1780 = vst [vmem:[%s3854_s25 + $0xc0] sm:$0xff] %v2294_v29 }
 0x25a   : > { %1781 = vst.msk [vmem:[%s3854_s25 + $0xc8] sm:$0xff] %vm441_vm0, %v2296_v45  ;;  %v1739_v52 = vpop.f32.mrb[58].mxu1 }
 0x25b   : > { %v2298_v34 = vadd.f32 %v1739_v52, %v1418_v49  ;;  %v1741_v62 = vpop.f32.mrb[59].mxu1 }
 0x25c   : > { %v2300_v63 = vadd.f32 %v1741_v62, %v1420_v30 }
 0x25d   : > { %1782 = vst [vmem:[%s3854_s25 + $0xd0] sm:$0xff] %v2298_v34 }
 0x25e   : > { %1783 = vst.msk [vmem:[%s3854_s25 + $0xd8] sm:$0xff] %vm441_vm0, %v2300_v63  ;;  %v1745_v0 = vpop.f32.mrb[60].mxu1 }
 0x25f   : > { %v2302_v36 = vadd.f32 %v1745_v0, %v1424_v1  ;;  %v1747_v3 = vpop.f32.mrb[61].mxu1 }
 0x260   : > { %v2304_v2 = vadd.f32 %v1747_v3, %v1426_v24 }
 0x261   : > { %1784 = vst [vmem:[%s3854_s25 + $0xe0] sm:$0xff] %v2302_v36 }
 0x262   : > { %1785 = vst.msk [vmem:[%s3854_s25 + $0xe8] sm:$0xff] %vm441_vm0, %v2304_v2  ;;  %v1751_v47 = vpop.f32.mrb[62].mxu1 }
 0x263   : > { %v2306_v14 = vadd.f32 %v1751_v47, %v1430_v6  ;;  %v1753_v17 = vpop.f32.mrb[63].mxu1 }
 0x264   : > { %v2308_v8 = vadd.f32 %v1753_v17, %v1432_v5 }
 0x265   : > { %1786 = vst [vmem:[%s3854_s25 + $0xf0] sm:$0xff] %v2306_v14 }
 0x266   : > { %1787 = vst.msk [vmem:[%s3854_s25 + $0xf8] sm:$0xff] %vm441_vm0, %v2308_v8 }
 0x267 PF: > { %s15_s18 = sadd.s32 1, %s2355_s18  }
 0x268   : > { %p12_p4 = scmp.ge.s32.totalorder %s15_s18, 4  }
 0x26a   :  { %14 = sbr.rel (!%p12_p4) target bundleno = 1 (0x1), region = 70 }

</bundles_post_ra>
